<compile_context>
chip_gen: v7x
topology: tpu7x:2x2x1
jax: 0.10.0
libtpu: 0.0.40
codegen_flags: <defaults>
</compile_context>

<pallas_src>
import functools
import math

import jax
import jax.numpy as jnp
from jax import lax
from jax.experimental import pallas as pl
from jax.experimental.pallas import tpu as pltpu

_LN_EPS = 1e-5                      # torch.nn.LayerNorm default
_INV_SQRT2 = 1.0 / math.sqrt(2.0)


def _gelu_exact(x):
    # nn.GELU() default = exact erf formulation.
    return 0.5 * x * (1.0 + lax.erf(x * _INV_SQRT2))


def _layer_norm_f32(x, gamma, beta):
    mu = jnp.mean(x, axis=-1, keepdims=True)
    xc = x - mu
    var = jnp.mean(xc * xc, axis=-1, keepdims=True)
    return xc * lax.rsqrt(var + _LN_EPS) * gamma + beta


def _round_up(x, m):
    return (x + m - 1) // m * m


def _choose_tile_n(n_tokens, target=256):
    """Token-tile rows for the FFN kernel.

    Prefer a divisor of n_tokens (multiple of 8) so no pad/slice HBM copies
    are needed; cap at `target` so (tile, H) f32 intermediates plus
    single-buffered weights stay well inside scoped VMEM on every generation
    and so n>=1024 tokens yield >= 4 grid steps (both v7x TensorCores get
    >= 2 pipelined steps each).
    """
    hi = min(target, _round_up(max(n_tokens, 1), 8))
    for t in range(hi, 7, -8):
        if n_tokens % t == 0:
            return t
    return hi


def _vmem_limit_bytes():
    # Raise the scoped-VMEM default (v5e: 16 MiB, v6e/v7x: 32 MiB) while
    # leaving headroom under physical VMEM (v7x: 64 MiB, v5e/v6e: 128 MiB).
    try:
        cap = pltpu.get_tpu_info().vmem_capacity_bytes
    except Exception:
        cap = 64 * 1024 * 1024
    return int(min(96 * 1024 * 1024, cap * 3 // 4))


def _const_spec(shape):
    """Constant-index (weight / bias) block, resident across all grid steps.

    Single-buffered (Buffered(1)) so the default double-buffering does not
    duplicate never-changing weights in VMEM; falls back to a plain spec if
    this jax build does not accept pipeline_mode.
    """
    idx = lambda i: (0, 0)
    try:
        return pl.BlockSpec(shape, idx, pipeline_mode=pl.Buffered(1))
    except Exception:
        return pl.BlockSpec(shape, idx)


# ---------------------------------------------------------------------------
# Kernel 1: fused LayerNorm + QKV projection + MHA + out-projection + residual.
# Grid = (batch,); one (S, C) slab per step, all intermediates stay in VMEM.
# ---------------------------------------------------------------------------
def _ln_attn_kernel(x_ref, g_ref, b_ref, wqkv_ref, bqkv_ref, wo_ref, bo_ref,
                    o_ref, *, num_heads, scale, compute_dtype):
    s, c = x_ref.shape[1], x_ref.shape[2]
    x = x_ref[...].reshape(s, c).astype(jnp.float32)        # residual slab
    xn = _layer_norm_f32(x, g_ref[...], b_ref[...])          # f32 LayerNorm
    xm = xn.astype(compute_dtype)

    # Folded to_q / to_kv @ mha.in_proj: one MXU pass over a (C, 3E) weight.
    qkv = (jnp.dot(xm, wqkv_ref[...], preferred_element_type=jnp.float32)
           + bqkv_ref[...])
    e = qkv.shape[1] // 3
    d = e // num_heads
    qkv_c = qkv.astype(compute_dtype)
    approx = compute_dtype != jnp.float32     # keep the f32 check path tight

    heads = []
    for h in range(num_heads):                # static unroll; all heads in VMEM
        q = qkv_c[:, h * d:(h + 1) * d]
        k = qkv_c[:, e + h * d:e + (h + 1) * d]
        v = qkv_c[:, 2 * e + h * d:2 * e + (h + 1) * d]
        # scores = q @ k^T (contract last dims directly; no in-kernel transpose)
        scores = lax.dot_general(q, k, (((1,), (1,)), ((), ())),
                                 preferred_element_type=jnp.float32) * scale
        scores = scores - jnp.max(scores, axis=-1, keepdims=True)
        p = jnp.exp(scores)
        inv_l = pl.reciprocal(jnp.sum(p, axis=-1, keepdims=True), approx=approx)
        # TODO(synk): attn_dropout is identity in eval mode.
        # Normalization folded into the (S, d) head output (EUP reciprocal +
        # S*d muls) instead of dividing the whole (S, S) probability matrix.
        o_h = jnp.dot(p.astype(compute_dtype), v,
                      preferred_element_type=jnp.float32) * inv_l
        heads.append(o_h)

    attn = jnp.concatenate(heads, axis=-1).astype(compute_dtype)   # (S, E)
    # Folded out_proj @ to_out: single K=E matmul (full MXU depth).
    out = (jnp.dot(attn, wo_ref[...], preferred_element_type=jnp.float32)
           + bo_ref[...])
    o_ref[...] = (out + x).reshape(o_ref.shape).astype(o_ref.dtype)


def _ln_attention_residual(latent, p, *, num_heads, compute_dtype, vmem_limit):
    b, s, c = latent.shape
    e3 = p["w_qkv"].shape[1]
    e = e3 // 3
    d = e // num_heads
    assert p["wo"].shape[1] == c
    scale = 1.0 / math.sqrt(d)
    # TODO(synk): for long sequences (S >~ 1-2K) or B=1 on v7x, switch to a
    # query-tiled / KV-tiled online-softmax grid instead of the full (S, S)
    # scores matrix per head.
    return pl.pallas_call(
        functools.partial(_ln_attn_kernel, num_heads=num_heads, scale=scale,
                          compute_dtype=compute_dtype),
        out_shape=jax.ShapeDtypeStruct((b, s, c), latent.dtype),
        grid_spec=pltpu.PrefetchScalarGridSpec(
            num_scalar_prefetch=0,
            grid=(b,),
            in_specs=[
                pl.BlockSpec((1, s, c), lambda bi: (bi, 0, 0)),
                _const_spec((1, c)), _const_spec((1, c)),
                _const_spec((c, e3)), _const_spec((1, e3)),
                _const_spec((e, c)), _const_spec((1, c)),
            ],
            out_specs=pl.BlockSpec((1, s, c), lambda bi: (bi, 0, 0)),
        ),
        compiler_params=pltpu.CompilerParams(
            dimension_semantics=("parallel",),
            vmem_limit_bytes=vmem_limit),
    )(latent, p["ln1_g"], p["ln1_b"], p["w_qkv"], p["b_qkv"], p["wo"], p["bo"])


# ---------------------------------------------------------------------------
# Kernel 2: LayerNorm + GatedLinear (split W1, exact GELU) + residual.
# ---------------------------------------------------------------------------
def _ln_ffn_kernel(x_ref, g_ref, b_ref,
                   w1a_ref, b1a_ref, w1b_ref, b1b_ref, w2_ref, b2_ref,
                   o_ref, *, compute_dtype):
    x = x_ref[...].astype(jnp.float32)                       # (tile_n, C)
    xn = _layer_norm_f32(x, g_ref[...], b_ref[...])
    xm = xn.astype(compute_dtype)
    # Split-weight formulation: chunk(h, 2, dim=-1) never slices a vreg.
    c1 = jnp.dot(xm, w1a_ref[...], preferred_element_type=jnp.float32) + b1a_ref[...]
    c2 = jnp.dot(xm, w1b_ref[...], preferred_element_type=jnp.float32) + b1b_ref[...]
    gated = c1 * _gelu_exact(c2)                             # f32 gate math
    # TODO(synk): ffn_dropout is identity in eval mode.
    y = jnp.dot(gated.astype(compute_dtype), w2_ref[...],
                preferred_element_type=jnp.float32) + b2_ref[...]
    o_ref[...] = (y + x).astype(o_ref.dtype)                 # + residual


def _ln_ffn(x2d, p, *, tile_n, compute_dtype, vmem_limit):
    n, c = x2d.shape
    hdim = p["w1a"].shape[1]
    co = p["w2"].shape[1]
    assert co == c, "Processor FFN keeps out_channels == latent_channels"
    n_pad = _round_up(n, tile_n)
    x = x2d if n_pad == n else jnp.pad(x2d, ((0, n_pad - n), (0, 0)))
    # TODO(synk): for very large hidden dims on v7x, add an 'arbitrary' grid
    # axis over H-chunks with an f32 accumulator to bound (tile_n, H) VMEM.
    out = pl.pallas_call(
        functools.partial(_ln_ffn_kernel, compute_dtype=compute_dtype),
        out_shape=jax.ShapeDtypeStruct((n_pad, co), x2d.dtype),
        grid_spec=pltpu.PrefetchScalarGridSpec(
            num_scalar_prefetch=0,
            grid=(n_pad // tile_n,),
            in_specs=[
                pl.BlockSpec((tile_n, c), lambda i: (i, 0)),
                _const_spec((1, c)), _const_spec((1, c)),
                _const_spec((c, hdim)), _const_spec((1, hdim)),
                _const_spec((c, hdim)), _const_spec((1, hdim)),
                _const_spec((hdim, co)), _const_spec((1, co)),
            ],
            out_specs=pl.BlockSpec((tile_n, co), lambda i: (i, 0)),
        ),
        compiler_params=pltpu.CompilerParams(
            dimension_semantics=("parallel",),
            vmem_limit_bytes=vmem_limit),
    )(x, p["ln2_g"], p["ln2_b"], p["w1a"], p["b1a"], p["w1b"], p["b1b"],
      p["w2"], p["b2"])
    return out if n_pad == n else out[:n]


# ---------------------------------------------------------------------------
# One-time parameter preparation (outside the per-call hot path).
# ---------------------------------------------------------------------------
def prepare_layer_params(raw, num_heads, compute_dtype):
    e = raw["to_q_w"].shape[0]          # embed_dim
    c = raw["to_q_w"].shape[1]          # latent_channels
    assert e % num_heads == 0

    wq_in = raw["in_proj_w"][:e]
    wk_in = raw["in_proj_w"][e:2 * e]
    wv_in = raw["in_proj_w"][2 * e:]
    bq = raw["in_proj_b"][:e]
    bk = raw["in_proj_b"][e:2 * e]
    bv = raw["in_proj_b"][2 * e:]

    # Fold to_q / to_kv into mha.in_proj (exact), then concatenate so the
    # kernel does ONE (C, 3E) projection matmul.
    wq_eff = (wq_in @ raw["to_q_w"]).T                 # [C, E] in-major
    wk_eff = (wk_in @ raw["to_kv_w"][:e]).T
    wv_eff = (wv_in @ raw["to_kv_w"][e:]).T
    w_qkv = jnp.concatenate([wq_eff, wk_eff, wv_eff], axis=1)   # [C, 3E]
    b_qkv = jnp.concatenate([bq, bk, bv]).reshape(1, 3 * e)

    # Fold mha.out_proj into to_out; kept as a single resident (E, C) weight.
    wo_eff = (raw["to_out_w"] @ raw["out_proj_w"]).T   # [E, C_out]
    bo_eff = raw["to_out_b"] + raw["out_proj_b"] @ raw["to_out_w"].T
    co = wo_eff.shape[1]

    # Split lin_1 so chunk_1 / chunk_2 never slice a vreg mid-lane.
    h = raw["lin1_w"].shape[0] // 2
    w1a = raw["lin1_w"][:h].T                          # [C, H]
    w1b = raw["lin1_w"][h:].T                          # [C, H]
    w2 = raw["lin2_w"].T                               # [H, C_out]

    cd, f32 = compute_dtype, jnp.float32
    return dict(
        ln1_g=raw["ln1_g"].reshape(1, c).astype(f32),
        ln1_b=raw["ln1_b"].reshape(1, c).astype(f32),
        w_qkv=w_qkv.astype(cd), b_qkv=b_qkv.astype(f32),
        wo=wo_eff.astype(cd), bo=bo_eff.reshape(1, co).astype(f32),
        ln2_g=raw["ln2_g"].reshape(1, c).astype(f32),
        ln2_b=raw["ln2_b"].reshape(1, c).astype(f32),
        w1a=w1a.astype(cd), b1a=raw["lin1_b"][:h].reshape(1, h).astype(f32),
        w1b=w1b.astype(cd), b1b=raw["lin1_b"][h:].reshape(1, h).astype(f32),
        w2=w2.astype(cd), b2=raw["lin2_b"].reshape(1, co).astype(f32),
    )


def processor_forward(latent, layers, *, num_heads, compute_dtype=jnp.bfloat16,
                      tile_n=None):
    """latent: [B, S, C] (f32 residual stream); layers: prepared param dicts."""
    b, s, c = latent.shape
    n = b * s
    if tile_n is None:
        tile_n = _choose_tile_n(n)
    vmem_limit = _vmem_limit_bytes()
    for p in layers:
        latent = _ln_attention_residual(latent, p, num_heads=num_heads,
                                        compute_dtype=compute_dtype,
                                        vmem_limit=vmem_limit)
        latent = _ln_ffn(latent.reshape(n, c), p, tile_n=tile_n,
                         compute_dtype=compute_dtype,
                         vmem_limit=vmem_limit).reshape(b, s, c)
    return latent


# ---------------------------------------------------------------------------
# Synthetic parameters (PyTorch layouts) and pure-JAX reference.
# ---------------------------------------------------------------------------
def init_layer_params(key, channels, num_heads, multiplier):
    e = channels                        # Attention embed_dim = latent_channels
    h = channels * multiplier
    ks = jax.random.split(key, 16)

    def rnd(k, shape, scale=0.05):
        return scale * jax.random.normal(k, shape, dtype=jnp.float32)

    return dict(
        ln1_g=1.0 + rnd(ks[0], (channels,)),
        ln1_b=rnd(ks[1], (channels,)),
        to_q_w=rnd(ks[2], (e, channels)),            # nn.Linear(C, E, bias=False)
        to_kv_w=rnd(ks[3], (2 * e, channels)),       # nn.Linear(C, 2E, bias=False)
        in_proj_w=rnd(ks[4], (3 * e, e)),            # mha.in_proj_weight
        in_proj_b=rnd(ks[5], (3 * e,)),              # mha.in_proj_bias
        out_proj_w=rnd(ks[6], (e, e)),               # mha.out_proj.weight
        out_proj_b=rnd(ks[7], (e,)),
        to_out_w=rnd(ks[8], (channels, e)),          # nn.Linear(E, C)
        to_out_b=rnd(ks[9], (channels,)),
        ln2_g=1.0 + rnd(ks[10], (channels,)),
        ln2_b=rnd(ks[11], (channels,)),
        lin1_w=rnd(ks[12], (2 * h, channels)),       # nn.Linear(C, 2H)
        lin1_b=rnd(ks[13], (2 * h,)),
        lin2_w=rnd(ks[14], (channels, h)),           # nn.Linear(H, C)
        lin2_b=rnd(ks[15], (channels,)),
    )


def _reference_processor(latent, raw_layers, num_heads):
    """Pure-JAX mirror of the PyTorch Processor.forward (eval mode)."""
    for p in raw_layers:
        x = _layer_norm_f32(latent, p["ln1_g"], p["ln1_b"])
        e = p["to_q_w"].shape[0]
        d = e // num_heads
        q0 = x @ p["to_q_w"].T
        kv = x @ p["to_kv_w"].T
        k0, v0 = kv[..., :e], kv[..., e:]
        wq, wk, wv = (p["in_proj_w"][:e], p["in_proj_w"][e:2 * e],
                      p["in_proj_w"][2 * e:])
        bq, bk, bv = (p["in_proj_b"][:e], p["in_proj_b"][e:2 * e],
                      p["in_proj_b"][2 * e:])
        q = q0 @ wq.T + bq
        k = k0 @ wk.T + bk
        v = v0 @ wv.T + bv
        b, s, _ = q.shape
        qh = q.reshape(b, s, num_heads, d).transpose(0, 2, 1, 3)
        kh = k.reshape(b, s, num_heads, d).transpose(0, 2, 1, 3)
        vh = v.reshape(b, s, num_heads, d).transpose(0, 2, 1, 3)
        scores = (qh @ kh.transpose(0, 1, 3, 2)) / math.sqrt(d)
        probs = jax.nn.softmax(scores, axis=-1)
        o = (probs @ vh).transpose(0, 2, 1, 3).reshape(b, s, e)
        o = o @ p["out_proj_w"].T + p["out_proj_b"]
        attn_out = o @ p["to_out_w"].T + p["to_out_b"]
        latent = attn_out + latent

        x = _layer_norm_f32(latent, p["ln2_g"], p["ln2_b"])
        hh = x @ p["lin1_w"].T + p["lin1_b"]
        half = hh.shape[-1] // 2
        g = hh[..., :half] * _gelu_exact(hh[..., half:])
        latent = g @ p["lin2_w"].T + p["lin2_b"] + latent
    return latent


if __name__ == "__main__":
    # Processor hyperparameters (small, deterministic).
    num_attn_blocks = 2
    latent_channels = 32
    num_heads = 4
    multiplier = 2
    attn_dropout = 0.1       # identity in eval mode
    ffn_dropout = 0.1        # identity in eval mode
    B, S = 2, 8              # latent: [batch, seq, latent_channels]

    key = jax.random.PRNGKey(0)
    keys = jax.random.split(key, num_attn_blocks + 1)
    latent = jax.random.normal(keys[0], (B, S, latent_channels), dtype=jnp.float32)

    raw_layers = [
        init_layer_params(keys[i + 1], latent_channels, num_heads, multiplier)
        for i in range(num_attn_blocks)
    ]

    y_ref = _reference_processor(latent, raw_layers, num_heads)

    # 1) f32 matmul operands: tight check of the kernels vs PyTorch-equivalent math.
    layers_f32 = [prepare_layer_params(r, num_heads, jnp.float32) for r in raw_layers]
    fwd_f32 = jax.jit(functools.partial(processor_forward, num_heads=num_heads,
                                        compute_dtype=jnp.float32))
    y_f32 = jax.block_until_ready(fwd_f32(latent, layers_f32))
    assert y_f32.shape == (B, S, latent_channels)
    assert jnp.allclose(y_f32, y_ref, atol=1e-4, rtol=1e-4), "f32 kernel mismatch"

    # 2) bf16 matmul operands (perf default for v6e/v7x MXU): relaxed tolerance.
    layers_bf16 = [prepare_layer_params(r, num_heads, jnp.bfloat16) for r in raw_layers]
    fwd_bf16 = jax.jit(functools.partial(processor_forward, num_heads=num_heads,
                                         compute_dtype=jnp.bfloat16))
    y_bf16 = jax.block_until_ready(fwd_bf16(latent, layers_bf16))
    assert jnp.allclose(y_bf16, y_ref, atol=5e-2, rtol=5e-2), "bf16 kernel drifted"

    print("KERNEL_OK")
</pallas_src>

<mosaic_0001>
module attributes {stable_mosaic.version = 11 : i64} {
  func.func @_ln_attn_kernel(%arg0: i32, %arg1: memref<1x8x32xf32, #tpu.memory_space<vmem>>, %arg2: memref<1x32xf32, #tpu.memory_space<vmem>>, %arg3: memref<1x32xf32, #tpu.memory_space<vmem>>, %arg4: memref<32x96xf32, #tpu.memory_space<vmem>>, %arg5: memref<1x96xf32, #tpu.memory_space<vmem>>, %arg6: memref<32x32xf32, #tpu.memory_space<vmem>>, %arg7: memref<1x32xf32, #tpu.memory_space<vmem>>, %arg8: memref<1x8x32xf32, #tpu.memory_space<vmem>>) attributes {dimension_semantics = [#tpu.dimension_semantics<parallel>], iteration_bounds = array<i64: 2>, scalar_prefetch = 0 : i64, scratch_operands = 0 : i64, tpu.core_type = #tpu.core_type<tc>, window_params = [{transform_indices = @transform_0, window_bounds = array<i64: 1, 8, 32>}, {pipeline_mode = #tpu.pipeline_mode<synchronous>, transform_indices = @transform_1, window_bounds = array<i64: 1, 32>}, {pipeline_mode = #tpu.pipeline_mode<synchronous>, transform_indices = @transform_2, window_bounds = array<i64: 1, 32>}, {pipeline_mode = #tpu.pipeline_mode<synchronous>, transform_indices = @transform_3, window_bounds = array<i64: 32, 96>}, {pipeline_mode = #tpu.pipeline_mode<synchronous>, transform_indices = @transform_4, window_bounds = array<i64: 1, 96>}, {pipeline_mode = #tpu.pipeline_mode<synchronous>, transform_indices = @transform_5, window_bounds = array<i64: 32, 32>}, {pipeline_mode = #tpu.pipeline_mode<synchronous>, transform_indices = @transform_6, window_bounds = array<i64: 1, 32>}, {transform_indices = @transform_7, window_bounds = array<i64: 1, 8, 32>}]} {
    %c0 = arith.constant 0 : index
    %c0_0 = arith.constant 0 : index
    %c0_1 = arith.constant 0 : index
    %0 = vector.load %arg1[%c0, %c0_0, %c0_1] : memref<1x8x32xf32, #tpu.memory_space<vmem>>, vector<1x8x32xf32>
    %1 = vector.shape_cast %0 : vector<1x8x32xf32> to vector<8x32xf32>
    %c0_2 = arith.constant 0 : index
    %c0_3 = arith.constant 0 : index
    %2 = vector.load %arg2[%c0_2, %c0_3] : memref<1x32xf32, #tpu.memory_space<vmem>>, vector<1x32xf32>
    %c0_4 = arith.constant 0 : index
    %c0_5 = arith.constant 0 : index
    %3 = vector.load %arg3[%c0_4, %c0_5] : memref<1x32xf32, #tpu.memory_space<vmem>>, vector<1x32xf32>
    %cst = arith.constant dense<0.000000e+00> : vector<8xf32>
    %4 = vector.multi_reduction <add>, %1, %cst [1] : vector<8x32xf32> to vector<8xf32>
    %5 = vector.shape_cast %4 : vector<8xf32> to vector<8x1xf32>
    %cst_6 = arith.constant 3.200000e+01 : f32
    %6 = vector.broadcast %cst_6 : f32 to vector<8x1xf32>
    %7 = arith.divf %5, %6 : vector<8x1xf32>
    %8 = vector.broadcast %7 : vector<8x1xf32> to vector<8x32xf32>
    %9 = arith.subf %1, %8 : vector<8x32xf32>
    %10 = arith.mulf %9, %9 : vector<8x32xf32>
    %cst_7 = arith.constant dense<0.000000e+00> : vector<8xf32>
    %11 = vector.multi_reduction <add>, %10, %cst_7 [1] : vector<8x32xf32> to vector<8xf32>
    %12 = vector.shape_cast %11 : vector<8xf32> to vector<8x1xf32>
    %cst_8 = arith.constant 3.200000e+01 : f32
    %13 = vector.broadcast %cst_8 : f32 to vector<8x1xf32>
    %14 = arith.divf %12, %13 : vector<8x1xf32>
    %cst_9 = arith.constant 9.99999974E-6 : f32
    %15 = vector.broadcast %cst_9 : f32 to vector<8x1xf32>
    %16 = arith.addf %14, %15 : vector<8x1xf32>
    %17 = math.rsqrt %16 : vector<8x1xf32>
    %18 = vector.broadcast %17 : vector<8x1xf32> to vector<8x32xf32>
    %19 = arith.mulf %9, %18 : vector<8x32xf32>
    %20 = vector.broadcast %2 : vector<1x32xf32> to vector<8x32xf32>
    %21 = arith.mulf %19, %20 : vector<8x32xf32>
    %22 = vector.broadcast %3 : vector<1x32xf32> to vector<8x32xf32>
    %23 = arith.addf %21, %22 : vector<8x32xf32>
    %c0_10 = arith.constant 0 : index
    %c0_11 = arith.constant 0 : index
    %24 = vector.load %arg4[%c0_10, %c0_11] : memref<32x96xf32, #tpu.memory_space<vmem>>, vector<32x96xf32>
    %cst_12 = arith.constant dense<0.000000e+00> : vector<8x96xf32>
    %25 = tpu.matmul %23, %24, %cst_12 {dimension_numbers = #tpu.dot_dimension_numbers<[1], [0], [0], [1], [0, 0, 1, 1], [], []>} : vector<8x32xf32>, vector<32x96xf32>, vector<8x96xf32> -> vector<8x96xf32>
    %c0_13 = arith.constant 0 : index
    %c0_14 = arith.constant 0 : index
    %26 = vector.load %arg5[%c0_13, %c0_14] : memref<1x96xf32, #tpu.memory_space<vmem>>, vector<1x96xf32>
    %27 = vector.broadcast %26 : vector<1x96xf32> to vector<8x96xf32>
    %28 = arith.addf %25, %27 : vector<8x96xf32>
    %29 = vector.extract_strided_slice %28 {offsets = [0, 0], sizes = [8, 8], strides = [1, 1]} : vector<8x96xf32> to vector<8x8xf32>
    %30 = vector.extract_strided_slice %28 {offsets = [0, 32], sizes = [8, 8], strides = [1, 1]} : vector<8x96xf32> to vector<8x8xf32>
    %31 = vector.extract_strided_slice %28 {offsets = [0, 64], sizes = [8, 8], strides = [1, 1]} : vector<8x96xf32> to vector<8x8xf32>
    %cst_15 = arith.constant dense<0.000000e+00> : vector<8x8xf32>
    %32 = tpu.matmul %29, %30, %cst_15 {dimension_numbers = #tpu.dot_dimension_numbers<[1], [1], [0], [0], [0, 0, 1, 0], [], []>} : vector<8x8xf32>, vector<8x8xf32>, vector<8x8xf32> -> vector<8x8xf32>
    %cst_16 = arith.constant 0.353553385 : f32
    %33 = vector.broadcast %cst_16 : f32 to vector<8x8xf32>
    %34 = arith.mulf %32, %33 : vector<8x8xf32>
    %cst_17 = arith.constant dense<0xFF800000> : vector<8xf32>
    %35 = vector.multi_reduction <maximumf>, %34, %cst_17 [1] : vector<8x8xf32> to vector<8xf32>
    %36 = vector.shape_cast %35 : vector<8xf32> to vector<8x1xf32>
    %37 = vector.broadcast %36 : vector<8x1xf32> to vector<8x8xf32>
    %38 = arith.subf %34, %37 : vector<8x8xf32>
    %39 = math.exp %38 : vector<8x8xf32>
    %cst_18 = arith.constant dense<0.000000e+00> : vector<8xf32>
    %40 = vector.multi_reduction <add>, %39, %cst_18 [1] : vector<8x8xf32> to vector<8xf32>
    %41 = vector.shape_cast %40 : vector<8xf32> to vector<8x1xf32>
    %42 = tpu.reciprocal %41 : vector<8x1xf32> -> vector<8x1xf32>
    %cst_19 = arith.constant dense<0.000000e+00> : vector<8x8xf32>
    %43 = tpu.matmul %39, %31, %cst_19 {dimension_numbers = #tpu.dot_dimension_numbers<[1], [0], [0], [1], [0, 0, 1, 1], [], []>} : vector<8x8xf32>, vector<8x8xf32>, vector<8x8xf32> -> vector<8x8xf32>
    %44 = vector.broadcast %42 : vector<8x1xf32> to vector<8x8xf32>
    %45 = arith.mulf %43, %44 : vector<8x8xf32>
    %46 = vector.extract_strided_slice %28 {offsets = [0, 8], sizes = [8, 8], strides = [1, 1]} : vector<8x96xf32> to vector<8x8xf32>
    %47 = vector.extract_strided_slice %28 {offsets = [0, 40], sizes = [8, 8], strides = [1, 1]} : vector<8x96xf32> to vector<8x8xf32>
    %48 = vector.extract_strided_slice %28 {offsets = [0, 72], sizes = [8, 8], strides = [1, 1]} : vector<8x96xf32> to vector<8x8xf32>
    %cst_20 = arith.constant dense<0.000000e+00> : vector<8x8xf32>
    %49 = tpu.matmul %46, %47, %cst_20 {dimension_numbers = #tpu.dot_dimension_numbers<[1], [1], [0], [0], [0, 0, 1, 0], [], []>} : vector<8x8xf32>, vector<8x8xf32>, vector<8x8xf32> -> vector<8x8xf32>
    %cst_21 = arith.constant 0.353553385 : f32
    %50 = vector.broadcast %cst_21 : f32 to vector<8x8xf32>
    %51 = arith.mulf %49, %50 : vector<8x8xf32>
    %cst_22 = arith.constant dense<0xFF800000> : vector<8xf32>
    %52 = vector.multi_reduction <maximumf>, %51, %cst_22 [1] : vector<8x8xf32> to vector<8xf32>
    %53 = vector.shape_cast %52 : vector<8xf32> to vector<8x1xf32>
    %54 = vector.broadcast %53 : vector<8x1xf32> to vector<8x8xf32>
    %55 = arith.subf %51, %54 : vector<8x8xf32>
    %56 = math.exp %55 : vector<8x8xf32>
    %cst_23 = arith.constant dense<0.000000e+00> : vector<8xf32>
    %57 = vector.multi_reduction <add>, %56, %cst_23 [1] : vector<8x8xf32> to vector<8xf32>
    %58 = vector.shape_cast %57 : vector<8xf32> to vector<8x1xf32>
    %59 = tpu.reciprocal %58 : vector<8x1xf32> -> vector<8x1xf32>
    %cst_24 = arith.constant dense<0.000000e+00> : vector<8x8xf32>
    %60 = tpu.matmul %56, %48, %cst_24 {dimension_numbers = #tpu.dot_dimension_numbers<[1], [0], [0], [1], [0, 0, 1, 1], [], []>} : vector<8x8xf32>, vector<8x8xf32>, vector<8x8xf32> -> vector<8x8xf32>
    %61 = vector.broadcast %59 : vector<8x1xf32> to vector<8x8xf32>
    %62 = arith.mulf %60, %61 : vector<8x8xf32>
    %63 = vector.extract_strided_slice %28 {offsets = [0, 16], sizes = [8, 8], strides = [1, 1]} : vector<8x96xf32> to vector<8x8xf32>
    %64 = vector.extract_strided_slice %28 {offsets = [0, 48], sizes = [8, 8], strides = [1, 1]} : vector<8x96xf32> to vector<8x8xf32>
    %65 = vector.extract_strided_slice %28 {offsets = [0, 80], sizes = [8, 8], strides = [1, 1]} : vector<8x96xf32> to vector<8x8xf32>
    %cst_25 = arith.constant dense<0.000000e+00> : vector<8x8xf32>
    %66 = tpu.matmul %63, %64, %cst_25 {dimension_numbers = #tpu.dot_dimension_numbers<[1], [1], [0], [0], [0, 0, 1, 0], [], []>} : vector<8x8xf32>, vector<8x8xf32>, vector<8x8xf32> -> vector<8x8xf32>
    %cst_26 = arith.constant 0.353553385 : f32
    %67 = vector.broadcast %cst_26 : f32 to vector<8x8xf32>
    %68 = arith.mulf %66, %67 : vector<8x8xf32>
    %cst_27 = arith.constant dense<0xFF800000> : vector<8xf32>
    %69 = vector.multi_reduction <maximumf>, %68, %cst_27 [1] : vector<8x8xf32> to vector<8xf32>
    %70 = vector.shape_cast %69 : vector<8xf32> to vector<8x1xf32>
    %71 = vector.broadcast %70 : vector<8x1xf32> to vector<8x8xf32>
    %72 = arith.subf %68, %71 : vector<8x8xf32>
    %73 = math.exp %72 : vector<8x8xf32>
    %cst_28 = arith.constant dense<0.000000e+00> : vector<8xf32>
    %74 = vector.multi_reduction <add>, %73, %cst_28 [1] : vector<8x8xf32> to vector<8xf32>
    %75 = vector.shape_cast %74 : vector<8xf32> to vector<8x1xf32>
    %76 = tpu.reciprocal %75 : vector<8x1xf32> -> vector<8x1xf32>
    %cst_29 = arith.constant dense<0.000000e+00> : vector<8x8xf32>
    %77 = tpu.matmul %73, %65, %cst_29 {dimension_numbers = #tpu.dot_dimension_numbers<[1], [0], [0], [1], [0, 0, 1, 1], [], []>} : vector<8x8xf32>, vector<8x8xf32>, vector<8x8xf32> -> vector<8x8xf32>
    %78 = vector.broadcast %76 : vector<8x1xf32> to vector<8x8xf32>
    %79 = arith.mulf %77, %78 : vector<8x8xf32>
    %80 = vector.extract_strided_slice %28 {offsets = [0, 24], sizes = [8, 8], strides = [1, 1]} : vector<8x96xf32> to vector<8x8xf32>
    %81 = vector.extract_strided_slice %28 {offsets = [0, 56], sizes = [8, 8], strides = [1, 1]} : vector<8x96xf32> to vector<8x8xf32>
    %82 = vector.extract_strided_slice %28 {offsets = [0, 88], sizes = [8, 8], strides = [1, 1]} : vector<8x96xf32> to vector<8x8xf32>
    %cst_30 = arith.constant dense<0.000000e+00> : vector<8x8xf32>
    %83 = tpu.matmul %80, %81, %cst_30 {dimension_numbers = #tpu.dot_dimension_numbers<[1], [1], [0], [0], [0, 0, 1, 0], [], []>} : vector<8x8xf32>, vector<8x8xf32>, vector<8x8xf32> -> vector<8x8xf32>
    %cst_31 = arith.constant 0.353553385 : f32
    %84 = vector.broadcast %cst_31 : f32 to vector<8x8xf32>
    %85 = arith.mulf %83, %84 : vector<8x8xf32>
    %cst_32 = arith.constant dense<0xFF800000> : vector<8xf32>
    %86 = vector.multi_reduction <maximumf>, %85, %cst_32 [1] : vector<8x8xf32> to vector<8xf32>
    %87 = vector.shape_cast %86 : vector<8xf32> to vector<8x1xf32>
    %88 = vector.broadcast %87 : vector<8x1xf32> to vector<8x8xf32>
    %89 = arith.subf %85, %88 : vector<8x8xf32>
    %90 = math.exp %89 : vector<8x8xf32>
    %cst_33 = arith.constant dense<0.000000e+00> : vector<8xf32>
    %91 = vector.multi_reduction <add>, %90, %cst_33 [1] : vector<8x8xf32> to vector<8xf32>
    %92 = vector.shape_cast %91 : vector<8xf32> to vector<8x1xf32>
    %93 = tpu.reciprocal %92 : vector<8x1xf32> -> vector<8x1xf32>
    %cst_34 = arith.constant dense<0.000000e+00> : vector<8x8xf32>
    %94 = tpu.matmul %90, %82, %cst_34 {dimension_numbers = #tpu.dot_dimension_numbers<[1], [0], [0], [1], [0, 0, 1, 1], [], []>} : vector<8x8xf32>, vector<8x8xf32>, vector<8x8xf32> -> vector<8x8xf32>
    %95 = vector.broadcast %93 : vector<8x1xf32> to vector<8x8xf32>
    %96 = arith.mulf %94, %95 : vector<8x8xf32>
    %97 = tpu.concatenate %45, %62, %79, %96 in 1 : vector<8x8xf32>, vector<8x8xf32>, vector<8x8xf32>, vector<8x8xf32> -> vector<8x32xf32>
    %c0_35 = arith.constant 0 : index
    %c0_36 = arith.constant 0 : index
    %98 = vector.load %arg6[%c0_35, %c0_36] : memref<32x32xf32, #tpu.memory_space<vmem>>, vector<32x32xf32>
    %cst_37 = arith.constant dense<0.000000e+00> : vector<8x32xf32>
    %99 = tpu.matmul %97, %98, %cst_37 {dimension_numbers = #tpu.dot_dimension_numbers<[1], [0], [0], [1], [0, 0, 1, 1], [], []>} : vector<8x32xf32>, vector<32x32xf32>, vector<8x32xf32> -> vector<8x32xf32>
    %c0_38 = arith.constant 0 : index
    %c0_39 = arith.constant 0 : index
    %100 = vector.load %arg7[%c0_38, %c0_39] : memref<1x32xf32, #tpu.memory_space<vmem>>, vector<1x32xf32>
    %101 = vector.broadcast %100 : vector<1x32xf32> to vector<8x32xf32>
    %102 = arith.addf %99, %101 : vector<8x32xf32>
    %103 = arith.addf %102, %1 : vector<8x32xf32>
    %104 = vector.shape_cast %103 : vector<8x32xf32> to vector<1x8x32xf32>
    %c0_40 = arith.constant 0 : index
    %c0_41 = arith.constant 0 : index
    %c0_42 = arith.constant 0 : index
    %105 = vector.load %arg8[%c0_40, %c0_41, %c0_42] : memref<1x8x32xf32, #tpu.memory_space<vmem>>, vector<1x8x32xf32>
    tpu.vector_store %arg8[%c0_40, %c0_41, %c0_42], %104 {strides = array<i32>} : memref<1x8x32xf32, #tpu.memory_space<vmem>>, vector<1x8x32xf32>,
    return
  }
  func.func @transform_0(%arg0: i32) -> (i32, i32, i32) {
    %c0_i32 = arith.constant 0 : i32
    %c0_i32_0 = arith.constant 0 : i32
    %c0_i32_1 = arith.constant 0 : i32
    return %arg0, %c0_i32, %c0_i32_0 : i32, i32, i32
  }
  func.func @transform_1(%arg0: i32) -> (i32, i32) {
    %c0_i32 = arith.constant 0 : i32
    %c0_i32_0 = arith.constant 0 : i32
    %c0_i32_1 = arith.constant 0 : i32
    return %c0_i32, %c0_i32_0 : i32, i32
  }
  func.func @transform_2(%arg0: i32) -> (i32, i32) {
    %c0_i32 = arith.constant 0 : i32
    %c0_i32_0 = arith.constant 0 : i32
    %c0_i32_1 = arith.constant 0 : i32
    return %c0_i32, %c0_i32_0 : i32, i32
  }
  func.func @transform_3(%arg0: i32) -> (i32, i32) {
    %c0_i32 = arith.constant 0 : i32
    %c0_i32_0 = arith.constant 0 : i32
    %c0_i32_1 = arith.constant 0 : i32
    return %c0_i32, %c0_i32_0 : i32, i32
  }
  func.func @transform_4(%arg0: i32) -> (i32, i32) {
    %c0_i32 = arith.constant 0 : i32
    %c0_i32_0 = arith.constant 0 : i32
    %c0_i32_1 = arith.constant 0 : i32
    return %c0_i32, %c0_i32_0 : i32, i32
  }
  func.func @transform_5(%arg0: i32) -> (i32, i32) {
    %c0_i32 = arith.constant 0 : i32
    %c0_i32_0 = arith.constant 0 : i32
    %c0_i32_1 = arith.constant 0 : i32
    return %c0_i32, %c0_i32_0 : i32, i32
  }
  func.func @transform_6(%arg0: i32) -> (i32, i32) {
    %c0_i32 = arith.constant 0 : i32
    %c0_i32_0 = arith.constant 0 : i32
    %c0_i32_1 = arith.constant 0 : i32
    return %c0_i32, %c0_i32_0 : i32, i32
  }
  func.func @transform_7(%arg0: i32) -> (i32, i32, i32) {
    %c0_i32 = arith.constant 0 : i32
    %c0_i32_0 = arith.constant 0 : i32
    %c0_i32_1 = arith.constant 0 : i32
    return %arg0, %c0_i32, %c0_i32_0 : i32, i32, i32
  }
}

module attributes {stable_mosaic.version = 11 : i64} {
  func.func @_ln_ffn_kernel(%arg0: i32, %arg1: memref<16x32xf32, #tpu.memory_space<vmem>>, %arg2: memref<1x32xf32, #tpu.memory_space<vmem>>, %arg3: memref<1x32xf32, #tpu.memory_space<vmem>>, %arg4: memref<32x64xf32, #tpu.memory_space<vmem>>, %arg5: memref<1x64xf32, #tpu.memory_space<vmem>>, %arg6: memref<32x64xf32, #tpu.memory_space<vmem>>, %arg7: memref<1x64xf32, #tpu.memory_space<vmem>>, %arg8: memref<64x32xf32, #tpu.memory_space<vmem>>, %arg9: memref<1x32xf32, #tpu.memory_space<vmem>>, %arg10: memref<16x32xf32, #tpu.memory_space<vmem>>) attributes {dimension_semantics = [#tpu.dimension_semantics<parallel>], iteration_bounds = array<i64: 1>, scalar_prefetch = 0 : i64, scratch_operands = 0 : i64, tpu.core_type = #tpu.core_type<tc>, window_params = [{transform_indices = @transform_0, window_bounds = array<i64: 16, 32>}, {pipeline_mode = #tpu.pipeline_mode<synchronous>, transform_indices = @transform_1, window_bounds = array<i64: 1, 32>}, {pipeline_mode = #tpu.pipeline_mode<synchronous>, transform_indices = @transform_2, window_bounds = array<i64: 1, 32>}, {pipeline_mode = #tpu.pipeline_mode<synchronous>, transform_indices = @transform_3, window_bounds = array<i64: 32, 64>}, {pipeline_mode = #tpu.pipeline_mode<synchronous>, transform_indices = @transform_4, window_bounds = array<i64: 1, 64>}, {pipeline_mode = #tpu.pipeline_mode<synchronous>, transform_indices = @transform_5, window_bounds = array<i64: 32, 64>}, {pipeline_mode = #tpu.pipeline_mode<synchronous>, transform_indices = @transform_6, window_bounds = array<i64: 1, 64>}, {pipeline_mode = #tpu.pipeline_mode<synchronous>, transform_indices = @transform_7, window_bounds = array<i64: 64, 32>}, {pipeline_mode = #tpu.pipeline_mode<synchronous>, transform_indices = @transform_8, window_bounds = array<i64: 1, 32>}, {transform_indices = @transform_9, window_bounds = array<i64: 16, 32>}]} {
    %c0 = arith.constant 0 : index
    %c0_0 = arith.constant 0 : index
    %0 = vector.load %arg1[%c0, %c0_0] : memref<16x32xf32, #tpu.memory_space<vmem>>, vector<16x32xf32>
    %c0_1 = arith.constant 0 : index
    %c0_2 = arith.constant 0 : index
    %1 = vector.load %arg2[%c0_1, %c0_2] : memref<1x32xf32, #tpu.memory_space<vmem>>, vector<1x32xf32>
    %c0_3 = arith.constant 0 : index
    %c0_4 = arith.constant 0 : index
    %2 = vector.load %arg3[%c0_3, %c0_4] : memref<1x32xf32, #tpu.memory_space<vmem>>, vector<1x32xf32>
    %cst = arith.constant dense<0.000000e+00> : vector<16xf32>
    %3 = vector.multi_reduction <add>, %0, %cst [1] : vector<16x32xf32> to vector<16xf32>
    %4 = vector.shape_cast %3 : vector<16xf32> to vector<16x1xf32>
    %cst_5 = arith.constant 3.200000e+01 : f32
    %5 = vector.broadcast %cst_5 : f32 to vector<16x1xf32>
    %6 = arith.divf %4, %5 : vector<16x1xf32>
    %7 = vector.broadcast %6 : vector<16x1xf32> to vector<16x32xf32>
    %8 = arith.subf %0, %7 : vector<16x32xf32>
    %9 = arith.mulf %8, %8 : vector<16x32xf32>
    %cst_6 = arith.constant dense<0.000000e+00> : vector<16xf32>
    %10 = vector.multi_reduction <add>, %9, %cst_6 [1] : vector<16x32xf32> to vector<16xf32>
    %11 = vector.shape_cast %10 : vector<16xf32> to vector<16x1xf32>
    %cst_7 = arith.constant 3.200000e+01 : f32
    %12 = vector.broadcast %cst_7 : f32 to vector<16x1xf32>
    %13 = arith.divf %11, %12 : vector<16x1xf32>
    %cst_8 = arith.constant 9.99999974E-6 : f32
    %14 = vector.broadcast %cst_8 : f32 to vector<16x1xf32>
    %15 = arith.addf %13, %14 : vector<16x1xf32>
    %16 = math.rsqrt %15 : vector<16x1xf32>
    %17 = vector.broadcast %16 : vector<16x1xf32> to vector<16x32xf32>
    %18 = arith.mulf %8, %17 : vector<16x32xf32>
    %19 = vector.broadcast %1 : vector<1x32xf32> to vector<16x32xf32>
    %20 = arith.mulf %18, %19 : vector<16x32xf32>
    %21 = vector.broadcast %2 : vector<1x32xf32> to vector<16x32xf32>
    %22 = arith.addf %20, %21 : vector<16x32xf32>
    %c0_9 = arith.constant 0 : index
    %c0_10 = arith.constant 0 : index
    %23 = vector.load %arg4[%c0_9, %c0_10] : memref<32x64xf32, #tpu.memory_space<vmem>>, vector<32x64xf32>
    %cst_11 = arith.constant dense<0.000000e+00> : vector<16x64xf32>
    %24 = tpu.matmul %22, %23, %cst_11 {dimension_numbers = #tpu.dot_dimension_numbers<[1], [0], [0], [1], [0, 0, 1, 1], [], []>} : vector<16x32xf32>, vector<32x64xf32>, vector<16x64xf32> -> vector<16x64xf32>
    %c0_12 = arith.constant 0 : index
    %c0_13 = arith.constant 0 : index
    %25 = vector.load %arg5[%c0_12, %c0_13] : memref<1x64xf32, #tpu.memory_space<vmem>>, vector<1x64xf32>
    %26 = vector.broadcast %25 : vector<1x64xf32> to vector<16x64xf32>
    %27 = arith.addf %24, %26 : vector<16x64xf32>
    %c0_14 = arith.constant 0 : index
    %c0_15 = arith.constant 0 : index
    %28 = vector.load %arg6[%c0_14, %c0_15] : memref<32x64xf32, #tpu.memory_space<vmem>>, vector<32x64xf32>
    %cst_16 = arith.constant dense<0.000000e+00> : vector<16x64xf32>
    %29 = tpu.matmul %22, %28, %cst_16 {dimension_numbers = #tpu.dot_dimension_numbers<[1], [0], [0], [1], [0, 0, 1, 1], [], []>} : vector<16x32xf32>, vector<32x64xf32>, vector<16x64xf32> -> vector<16x64xf32>
    %c0_17 = arith.constant 0 : index
    %c0_18 = arith.constant 0 : index
    %30 = vector.load %arg7[%c0_17, %c0_18] : memref<1x64xf32, #tpu.memory_space<vmem>>, vector<1x64xf32>
    %31 = vector.broadcast %30 : vector<1x64xf32> to vector<16x64xf32>
    %32 = arith.addf %29, %31 : vector<16x64xf32>
    %cst_19 = arith.constant 5.000000e-01 : f32
    %33 = vector.broadcast %cst_19 : f32 to vector<16x64xf32>
    %34 = arith.mulf %33, %32 : vector<16x64xf32>
    %cst_20 = arith.constant 0.707106769 : f32
    %35 = vector.broadcast %cst_20 : f32 to vector<16x64xf32>
    %36 = arith.mulf %32, %35 : vector<16x64xf32>
    %37 = math.erf %36 : vector<16x64xf32>
    %cst_21 = arith.constant 1.000000e+00 : f32
    %38 = vector.broadcast %cst_21 : f32 to vector<16x64xf32>
    %39 = arith.addf %38, %37 : vector<16x64xf32>
    %40 = arith.mulf %34, %39 : vector<16x64xf32>
    %41 = arith.mulf %27, %40 : vector<16x64xf32>
    %c0_22 = arith.constant 0 : index
    %c0_23 = arith.constant 0 : index
    %42 = vector.load %arg8[%c0_22, %c0_23] : memref<64x32xf32, #tpu.memory_space<vmem>>, vector<64x32xf32>
    %cst_24 = arith.constant dense<0.000000e+00> : vector<16x32xf32>
    %43 = tpu.matmul %41, %42, %cst_24 {dimension_numbers = #tpu.dot_dimension_numbers<[1], [0], [0], [1], [0, 0, 1, 1], [], []>} : vector<16x64xf32>, vector<64x32xf32>, vector<16x32xf32> -> vector<16x32xf32>
    %c0_25 = arith.constant 0 : index
    %c0_26 = arith.constant 0 : index
    %44 = vector.load %arg9[%c0_25, %c0_26] : memref<1x32xf32, #tpu.memory_space<vmem>>, vector<1x32xf32>
    %45 = vector.broadcast %44 : vector<1x32xf32> to vector<16x32xf32>
    %46 = arith.addf %43, %45 : vector<16x32xf32>
    %47 = arith.addf %46, %0 : vector<16x32xf32>
    %c0_27 = arith.constant 0 : index
    %c0_28 = arith.constant 0 : index
    %48 = vector.load %arg10[%c0_27, %c0_28] : memref<16x32xf32, #tpu.memory_space<vmem>>, vector<16x32xf32>
    tpu.vector_store %arg10[%c0_27, %c0_28], %47 {strides = array<i32>} : memref<16x32xf32, #tpu.memory_space<vmem>>, vector<16x32xf32>,
    return
  }
  func.func @transform_0(%arg0: i32) -> (i32, i32) {
    %c0_i32 = arith.constant 0 : i32
    %c0_i32_0 = arith.constant 0 : i32
    return %arg0, %c0_i32 : i32, i32
  }
  func.func @transform_1(%arg0: i32) -> (i32, i32) {
    %c0_i32 = arith.constant 0 : i32
    %c0_i32_0 = arith.constant 0 : i32
    %c0_i32_1 = arith.constant 0 : i32
    return %c0_i32, %c0_i32_0 : i32, i32
  }
  func.func @transform_2(%arg0: i32) -> (i32, i32) {
    %c0_i32 = arith.constant 0 : i32
    %c0_i32_0 = arith.constant 0 : i32
    %c0_i32_1 = arith.constant 0 : i32
    return %c0_i32, %c0_i32_0 : i32, i32
  }
  func.func @transform_3(%arg0: i32) -> (i32, i32) {
    %c0_i32 = arith.constant 0 : i32
    %c0_i32_0 = arith.constant 0 : i32
    %c0_i32_1 = arith.constant 0 : i32
    return %c0_i32, %c0_i32_0 : i32, i32
  }
  func.func @transform_4(%arg0: i32) -> (i32, i32) {
    %c0_i32 = arith.constant 0 : i32
    %c0_i32_0 = arith.constant 0 : i32
    %c0_i32_1 = arith.constant 0 : i32
    return %c0_i32, %c0_i32_0 : i32, i32
  }
  func.func @transform_5(%arg0: i32) -> (i32, i32) {
    %c0_i32 = arith.constant 0 : i32
    %c0_i32_0 = arith.constant 0 : i32
    %c0_i32_1 = arith.constant 0 : i32
    return %c0_i32, %c0_i32_0 : i32, i32
  }
  func.func @transform_6(%arg0: i32) -> (i32, i32) {
    %c0_i32 = arith.constant 0 : i32
    %c0_i32_0 = arith.constant 0 : i32
    %c0_i32_1 = arith.constant 0 : i32
    return %c0_i32, %c0_i32_0 : i32, i32
  }
  func.func @transform_7(%arg0: i32) -> (i32, i32) {
    %c0_i32 = arith.constant 0 : i32
    %c0_i32_0 = arith.constant 0 : i32
    %c0_i32_1 = arith.constant 0 : i32
    return %c0_i32, %c0_i32_0 : i32, i32
  }
  func.func @transform_8(%arg0: i32) -> (i32, i32) {
    %c0_i32 = arith.constant 0 : i32
    %c0_i32_0 = arith.constant 0 : i32
    %c0_i32_1 = arith.constant 0 : i32
    return %c0_i32, %c0_i32_0 : i32, i32
  }
  func.func @transform_9(%arg0: i32) -> (i32, i32) {
    %c0_i32 = arith.constant 0 : i32
    %c0_i32_0 = arith.constant 0 : i32
    return %arg0, %c0_i32 : i32, i32
  }
}

module attributes {stable_mosaic.version = 11 : i64} {
  func.func @_ln_attn_kernel(%arg0: i32, %arg1: memref<1x8x32xf32, #tpu.memory_space<vmem>>, %arg2: memref<1x32xf32, #tpu.memory_space<vmem>>, %arg3: memref<1x32xf32, #tpu.memory_space<vmem>>, %arg4: memref<32x96xf32, #tpu.memory_space<vmem>>, %arg5: memref<1x96xf32, #tpu.memory_space<vmem>>, %arg6: memref<32x32xf32, #tpu.memory_space<vmem>>, %arg7: memref<1x32xf32, #tpu.memory_space<vmem>>, %arg8: memref<1x8x32xf32, #tpu.memory_space<vmem>>) attributes {dimension_semantics = [#tpu.dimension_semantics<parallel>], iteration_bounds = array<i64: 2>, scalar_prefetch = 0 : i64, scratch_operands = 0 : i64, tpu.core_type = #tpu.core_type<tc>, window_params = [{transform_indices = @transform_0, window_bounds = array<i64: 1, 8, 32>}, {pipeline_mode = #tpu.pipeline_mode<synchronous>, transform_indices = @transform_1, window_bounds = array<i64: 1, 32>}, {pipeline_mode = #tpu.pipeline_mode<synchronous>, transform_indices = @transform_2, window_bounds = array<i64: 1, 32>}, {pipeline_mode = #tpu.pipeline_mode<synchronous>, transform_indices = @transform_3, window_bounds = array<i64: 32, 96>}, {pipeline_mode = #tpu.pipeline_mode<synchronous>, transform_indices = @transform_4, window_bounds = array<i64: 1, 96>}, {pipeline_mode = #tpu.pipeline_mode<synchronous>, transform_indices = @transform_5, window_bounds = array<i64: 32, 32>}, {pipeline_mode = #tpu.pipeline_mode<synchronous>, transform_indices = @transform_6, window_bounds = array<i64: 1, 32>}, {transform_indices = @transform_7, window_bounds = array<i64: 1, 8, 32>}]} {
    %c0 = arith.constant 0 : index
    %c0_0 = arith.constant 0 : index
    %c0_1 = arith.constant 0 : index
    %0 = vector.load %arg1[%c0, %c0_0, %c0_1] : memref<1x8x32xf32, #tpu.memory_space<vmem>>, vector<1x8x32xf32>
    %1 = vector.shape_cast %0 : vector<1x8x32xf32> to vector<8x32xf32>
    %c0_2 = arith.constant 0 : index
    %c0_3 = arith.constant 0 : index
    %2 = vector.load %arg2[%c0_2, %c0_3] : memref<1x32xf32, #tpu.memory_space<vmem>>, vector<1x32xf32>
    %c0_4 = arith.constant 0 : index
    %c0_5 = arith.constant 0 : index
    %3 = vector.load %arg3[%c0_4, %c0_5] : memref<1x32xf32, #tpu.memory_space<vmem>>, vector<1x32xf32>
    %cst = arith.constant dense<0.000000e+00> : vector<8xf32>
    %4 = vector.multi_reduction <add>, %1, %cst [1] : vector<8x32xf32> to vector<8xf32>
    %5 = vector.shape_cast %4 : vector<8xf32> to vector<8x1xf32>
    %cst_6 = arith.constant 3.200000e+01 : f32
    %6 = vector.broadcast %cst_6 : f32 to vector<8x1xf32>
    %7 = arith.divf %5, %6 : vector<8x1xf32>
    %8 = vector.broadcast %7 : vector<8x1xf32> to vector<8x32xf32>
    %9 = arith.subf %1, %8 : vector<8x32xf32>
    %10 = arith.mulf %9, %9 : vector<8x32xf32>
    %cst_7 = arith.constant dense<0.000000e+00> : vector<8xf32>
    %11 = vector.multi_reduction <add>, %10, %cst_7 [1] : vector<8x32xf32> to vector<8xf32>
    %12 = vector.shape_cast %11 : vector<8xf32> to vector<8x1xf32>
    %cst_8 = arith.constant 3.200000e+01 : f32
    %13 = vector.broadcast %cst_8 : f32 to vector<8x1xf32>
    %14 = arith.divf %12, %13 : vector<8x1xf32>
    %cst_9 = arith.constant 9.99999974E-6 : f32
    %15 = vector.broadcast %cst_9 : f32 to vector<8x1xf32>
    %16 = arith.addf %14, %15 : vector<8x1xf32>
    %17 = math.rsqrt %16 : vector<8x1xf32>
    %18 = vector.broadcast %17 : vector<8x1xf32> to vector<8x32xf32>
    %19 = arith.mulf %9, %18 : vector<8x32xf32>
    %20 = vector.broadcast %2 : vector<1x32xf32> to vector<8x32xf32>
    %21 = arith.mulf %19, %20 : vector<8x32xf32>
    %22 = vector.broadcast %3 : vector<1x32xf32> to vector<8x32xf32>
    %23 = arith.addf %21, %22 : vector<8x32xf32>
    %c0_10 = arith.constant 0 : index
    %c0_11 = arith.constant 0 : index
    %24 = vector.load %arg4[%c0_10, %c0_11] : memref<32x96xf32, #tpu.memory_space<vmem>>, vector<32x96xf32>
    %cst_12 = arith.constant dense<0.000000e+00> : vector<8x96xf32>
    %25 = tpu.matmul %23, %24, %cst_12 {dimension_numbers = #tpu.dot_dimension_numbers<[1], [0], [0], [1], [0, 0, 1, 1], [], []>} : vector<8x32xf32>, vector<32x96xf32>, vector<8x96xf32> -> vector<8x96xf32>
    %c0_13 = arith.constant 0 : index
    %c0_14 = arith.constant 0 : index
    %26 = vector.load %arg5[%c0_13, %c0_14] : memref<1x96xf32, #tpu.memory_space<vmem>>, vector<1x96xf32>
    %27 = vector.broadcast %26 : vector<1x96xf32> to vector<8x96xf32>
    %28 = arith.addf %25, %27 : vector<8x96xf32>
    %29 = vector.extract_strided_slice %28 {offsets = [0, 0], sizes = [8, 8], strides = [1, 1]} : vector<8x96xf32> to vector<8x8xf32>
    %30 = vector.extract_strided_slice %28 {offsets = [0, 32], sizes = [8, 8], strides = [1, 1]} : vector<8x96xf32> to vector<8x8xf32>
    %31 = vector.extract_strided_slice %28 {offsets = [0, 64], sizes = [8, 8], strides = [1, 1]} : vector<8x96xf32> to vector<8x8xf32>
    %cst_15 = arith.constant dense<0.000000e+00> : vector<8x8xf32>
    %32 = tpu.matmul %29, %30, %cst_15 {dimension_numbers = #tpu.dot_dimension_numbers<[1], [1], [0], [0], [0, 0, 1, 0], [], []>} : vector<8x8xf32>, vector<8x8xf32>, vector<8x8xf32> -> vector<8x8xf32>
    %cst_16 = arith.constant 0.353553385 : f32
    %33 = vector.broadcast %cst_16 : f32 to vector<8x8xf32>
    %34 = arith.mulf %32, %33 : vector<8x8xf32>
    %cst_17 = arith.constant dense<0xFF800000> : vector<8xf32>
    %35 = vector.multi_reduction <maximumf>, %34, %cst_17 [1] : vector<8x8xf32> to vector<8xf32>
    %36 = vector.shape_cast %35 : vector<8xf32> to vector<8x1xf32>
    %37 = vector.broadcast %36 : vector<8x1xf32> to vector<8x8xf32>
    %38 = arith.subf %34, %37 : vector<8x8xf32>
    %39 = math.exp %38 : vector<8x8xf32>
    %cst_18 = arith.constant dense<0.000000e+00> : vector<8xf32>
    %40 = vector.multi_reduction <add>, %39, %cst_18 [1] : vector<8x8xf32> to vector<8xf32>
    %41 = vector.shape_cast %40 : vector<8xf32> to vector<8x1xf32>
    %42 = tpu.reciprocal %41 : vector<8x1xf32> -> vector<8x1xf32>
    %cst_19 = arith.constant dense<0.000000e+00> : vector<8x8xf32>
    %43 = tpu.matmul %39, %31, %cst_19 {dimension_numbers = #tpu.dot_dimension_numbers<[1], [0], [0], [1], [0, 0, 1, 1], [], []>} : vector<8x8xf32>, vector<8x8xf32>, vector<8x8xf32> -> vector<8x8xf32>
    %44 = vector.broadcast %42 : vector<8x1xf32> to vector<8x8xf32>
    %45 = arith.mulf %43, %44 : vector<8x8xf32>
    %46 = vector.extract_strided_slice %28 {offsets = [0, 8], sizes = [8, 8], strides = [1, 1]} : vector<8x96xf32> to vector<8x8xf32>
    %47 = vector.extract_strided_slice %28 {offsets = [0, 40], sizes = [8, 8], strides = [1, 1]} : vector<8x96xf32> to vector<8x8xf32>
    %48 = vector.extract_strided_slice %28 {offsets = [0, 72], sizes = [8, 8], strides = [1, 1]} : vector<8x96xf32> to vector<8x8xf32>
    %cst_20 = arith.constant dense<0.000000e+00> : vector<8x8xf32>
    %49 = tpu.matmul %46, %47, %cst_20 {dimension_numbers = #tpu.dot_dimension_numbers<[1], [1], [0], [0], [0, 0, 1, 0], [], []>} : vector<8x8xf32>, vector<8x8xf32>, vector<8x8xf32> -> vector<8x8xf32>
    %cst_21 = arith.constant 0.353553385 : f32
    %50 = vector.broadcast %cst_21 : f32 to vector<8x8xf32>
    %51 = arith.mulf %49, %50 : vector<8x8xf32>
    %cst_22 = arith.constant dense<0xFF800000> : vector<8xf32>
    %52 = vector.multi_reduction <maximumf>, %51, %cst_22 [1] : vector<8x8xf32> to vector<8xf32>
    %53 = vector.shape_cast %52 : vector<8xf32> to vector<8x1xf32>
    %54 = vector.broadcast %53 : vector<8x1xf32> to vector<8x8xf32>
    %55 = arith.subf %51, %54 : vector<8x8xf32>
    %56 = math.exp %55 : vector<8x8xf32>
    %cst_23 = arith.constant dense<0.000000e+00> : vector<8xf32>
    %57 = vector.multi_reduction <add>, %56, %cst_23 [1] : vector<8x8xf32> to vector<8xf32>
    %58 = vector.shape_cast %57 : vector<8xf32> to vector<8x1xf32>
    %59 = tpu.reciprocal %58 : vector<8x1xf32> -> vector<8x1xf32>
    %cst_24 = arith.constant dense<0.000000e+00> : vector<8x8xf32>
    %60 = tpu.matmul %56, %48, %cst_24 {dimension_numbers = #tpu.dot_dimension_numbers<[1], [0], [0], [1], [0, 0, 1, 1], [], []>} : vector<8x8xf32>, vector<8x8xf32>, vector<8x8xf32> -> vector<8x8xf32>
    %61 = vector.broadcast %59 : vector<8x1xf32> to vector<8x8xf32>
    %62 = arith.mulf %60, %61 : vector<8x8xf32>
    %63 = vector.extract_strided_slice %28 {offsets = [0, 16], sizes = [8, 8], strides = [1, 1]} : vector<8x96xf32> to vector<8x8xf32>
    %64 = vector.extract_strided_slice %28 {offsets = [0, 48], sizes = [8, 8], strides = [1, 1]} : vector<8x96xf32> to vector<8x8xf32>
    %65 = vector.extract_strided_slice %28 {offsets = [0, 80], sizes = [8, 8], strides = [1, 1]} : vector<8x96xf32> to vector<8x8xf32>
    %cst_25 = arith.constant dense<0.000000e+00> : vector<8x8xf32>
    %66 = tpu.matmul %63, %64, %cst_25 {dimension_numbers = #tpu.dot_dimension_numbers<[1], [1], [0], [0], [0, 0, 1, 0], [], []>} : vector<8x8xf32>, vector<8x8xf32>, vector<8x8xf32> -> vector<8x8xf32>
    %cst_26 = arith.constant 0.353553385 : f32
    %67 = vector.broadcast %cst_26 : f32 to vector<8x8xf32>
    %68 = arith.mulf %66, %67 : vector<8x8xf32>
    %cst_27 = arith.constant dense<0xFF800000> : vector<8xf32>
    %69 = vector.multi_reduction <maximumf>, %68, %cst_27 [1] : vector<8x8xf32> to vector<8xf32>
    %70 = vector.shape_cast %69 : vector<8xf32> to vector<8x1xf32>
    %71 = vector.broadcast %70 : vector<8x1xf32> to vector<8x8xf32>
    %72 = arith.subf %68, %71 : vector<8x8xf32>
    %73 = math.exp %72 : vector<8x8xf32>
    %cst_28 = arith.constant dense<0.000000e+00> : vector<8xf32>
    %74 = vector.multi_reduction <add>, %73, %cst_28 [1] : vector<8x8xf32> to vector<8xf32>
    %75 = vector.shape_cast %74 : vector<8xf32> to vector<8x1xf32>
    %76 = tpu.reciprocal %75 : vector<8x1xf32> -> vector<8x1xf32>
    %cst_29 = arith.constant dense<0.000000e+00> : vector<8x8xf32>
    %77 = tpu.matmul %73, %65, %cst_29 {dimension_numbers = #tpu.dot_dimension_numbers<[1], [0], [0], [1], [0, 0, 1, 1], [], []>} : vector<8x8xf32>, vector<8x8xf32>, vector<8x8xf32> -> vector<8x8xf32>
    %78 = vector.broadcast %76 : vector<8x1xf32> to vector<8x8xf32>
    %79 = arith.mulf %77, %78 : vector<8x8xf32>
    %80 = vector.extract_strided_slice %28 {offsets = [0, 24], sizes = [8, 8], strides = [1, 1]} : vector<8x96xf32> to vector<8x8xf32>
    %81 = vector.extract_strided_slice %28 {offsets = [0, 56], sizes = [8, 8], strides = [1, 1]} : vector<8x96xf32> to vector<8x8xf32>
    %82 = vector.extract_strided_slice %28 {offsets = [0, 88], sizes = [8, 8], strides = [1, 1]} : vector<8x96xf32> to vector<8x8xf32>
    %cst_30 = arith.constant dense<0.000000e+00> : vector<8x8xf32>
    %83 = tpu.matmul %80, %81, %cst_30 {dimension_numbers = #tpu.dot_dimension_numbers<[1], [1], [0], [0], [0, 0, 1, 0], [], []>} : vector<8x8xf32>, vector<8x8xf32>, vector<8x8xf32> -> vector<8x8xf32>
    %cst_31 = arith.constant 0.353553385 : f32
    %84 = vector.broadcast %cst_31 : f32 to vector<8x8xf32>
    %85 = arith.mulf %83, %84 : vector<8x8xf32>
    %cst_32 = arith.constant dense<0xFF800000> : vector<8xf32>
    %86 = vector.multi_reduction <maximumf>, %85, %cst_32 [1] : vector<8x8xf32> to vector<8xf32>
    %87 = vector.shape_cast %86 : vector<8xf32> to vector<8x1xf32>
    %88 = vector.broadcast %87 : vector<8x1xf32> to vector<8x8xf32>
    %89 = arith.subf %85, %88 : vector<8x8xf32>
    %90 = math.exp %89 : vector<8x8xf32>
    %cst_33 = arith.constant dense<0.000000e+00> : vector<8xf32>
    %91 = vector.multi_reduction <add>, %90, %cst_33 [1] : vector<8x8xf32> to vector<8xf32>
    %92 = vector.shape_cast %91 : vector<8xf32> to vector<8x1xf32>
    %93 = tpu.reciprocal %92 : vector<8x1xf32> -> vector<8x1xf32>
    %cst_34 = arith.constant dense<0.000000e+00> : vector<8x8xf32>
    %94 = tpu.matmul %90, %82, %cst_34 {dimension_numbers = #tpu.dot_dimension_numbers<[1], [0], [0], [1], [0, 0, 1, 1], [], []>} : vector<8x8xf32>, vector<8x8xf32>, vector<8x8xf32> -> vector<8x8xf32>
    %95 = vector.broadcast %93 : vector<8x1xf32> to vector<8x8xf32>
    %96 = arith.mulf %94, %95 : vector<8x8xf32>
    %97 = tpu.concatenate %45, %62, %79, %96 in 1 : vector<8x8xf32>, vector<8x8xf32>, vector<8x8xf32>, vector<8x8xf32> -> vector<8x32xf32>
    %c0_35 = arith.constant 0 : index
    %c0_36 = arith.constant 0 : index
    %98 = vector.load %arg6[%c0_35, %c0_36] : memref<32x32xf32, #tpu.memory_space<vmem>>, vector<32x32xf32>
    %cst_37 = arith.constant dense<0.000000e+00> : vector<8x32xf32>
    %99 = tpu.matmul %97, %98, %cst_37 {dimension_numbers = #tpu.dot_dimension_numbers<[1], [0], [0], [1], [0, 0, 1, 1], [], []>} : vector<8x32xf32>, vector<32x32xf32>, vector<8x32xf32> -> vector<8x32xf32>
    %c0_38 = arith.constant 0 : index
    %c0_39 = arith.constant 0 : index
    %100 = vector.load %arg7[%c0_38, %c0_39] : memref<1x32xf32, #tpu.memory_space<vmem>>, vector<1x32xf32>
    %101 = vector.broadcast %100 : vector<1x32xf32> to vector<8x32xf32>
    %102 = arith.addf %99, %101 : vector<8x32xf32>
    %103 = arith.addf %102, %1 : vector<8x32xf32>
    %104 = vector.shape_cast %103 : vector<8x32xf32> to vector<1x8x32xf32>
    %c0_40 = arith.constant 0 : index
    %c0_41 = arith.constant 0 : index
    %c0_42 = arith.constant 0 : index
    %105 = vector.load %arg8[%c0_40, %c0_41, %c0_42] : memref<1x8x32xf32, #tpu.memory_space<vmem>>, vector<1x8x32xf32>
    tpu.vector_store %arg8[%c0_40, %c0_41, %c0_42], %104 {strides = array<i32>} : memref<1x8x32xf32, #tpu.memory_space<vmem>>, vector<1x8x32xf32>,
    return
  }
  func.func @transform_0(%arg0: i32) -> (i32, i32, i32) {
    %c0_i32 = arith.constant 0 : i32
    %c0_i32_0 = arith.constant 0 : i32
    %c0_i32_1 = arith.constant 0 : i32
    return %arg0, %c0_i32, %c0_i32_0 : i32, i32, i32
  }
  func.func @transform_1(%arg0: i32) -> (i32, i32) {
    %c0_i32 = arith.constant 0 : i32
    %c0_i32_0 = arith.constant 0 : i32
    %c0_i32_1 = arith.constant 0 : i32
    return %c0_i32, %c0_i32_0 : i32, i32
  }
  func.func @transform_2(%arg0: i32) -> (i32, i32) {
    %c0_i32 = arith.constant 0 : i32
    %c0_i32_0 = arith.constant 0 : i32
    %c0_i32_1 = arith.constant 0 : i32
    return %c0_i32, %c0_i32_0 : i32, i32
  }
  func.func @transform_3(%arg0: i32) -> (i32, i32) {
    %c0_i32 = arith.constant 0 : i32
    %c0_i32_0 = arith.constant 0 : i32
    %c0_i32_1 = arith.constant 0 : i32
    return %c0_i32, %c0_i32_0 : i32, i32
  }
  func.func @transform_4(%arg0: i32) -> (i32, i32) {
    %c0_i32 = arith.constant 0 : i32
    %c0_i32_0 = arith.constant 0 : i32
    %c0_i32_1 = arith.constant 0 : i32
    return %c0_i32, %c0_i32_0 : i32, i32
  }
  func.func @transform_5(%arg0: i32) -> (i32, i32) {
    %c0_i32 = arith.constant 0 : i32
    %c0_i32_0 = arith.constant 0 : i32
    %c0_i32_1 = arith.constant 0 : i32
    return %c0_i32, %c0_i32_0 : i32, i32
  }
  func.func @transform_6(%arg0: i32) -> (i32, i32) {
    %c0_i32 = arith.constant 0 : i32
    %c0_i32_0 = arith.constant 0 : i32
    %c0_i32_1 = arith.constant 0 : i32
    return %c0_i32, %c0_i32_0 : i32, i32
  }
  func.func @transform_7(%arg0: i32) -> (i32, i32, i32) {
    %c0_i32 = arith.constant 0 : i32
    %c0_i32_0 = arith.constant 0 : i32
    %c0_i32_1 = arith.constant 0 : i32
    return %arg0, %c0_i32, %c0_i32_0 : i32, i32, i32
  }
}

module attributes {stable_mosaic.version = 11 : i64} {
  func.func @_ln_ffn_kernel(%arg0: i32, %arg1: memref<16x32xf32, #tpu.memory_space<vmem>>, %arg2: memref<1x32xf32, #tpu.memory_space<vmem>>, %arg3: memref<1x32xf32, #tpu.memory_space<vmem>>, %arg4: memref<32x64xf32, #tpu.memory_space<vmem>>, %arg5: memref<1x64xf32, #tpu.memory_space<vmem>>, %arg6: memref<32x64xf32, #tpu.memory_space<vmem>>, %arg7: memref<1x64xf32, #tpu.memory_space<vmem>>, %arg8: memref<64x32xf32, #tpu.memory_space<vmem>>, %arg9: memref<1x32xf32, #tpu.memory_space<vmem>>, %arg10: memref<16x32xf32, #tpu.memory_space<vmem>>) attributes {dimension_semantics = [#tpu.dimension_semantics<parallel>], iteration_bounds = array<i64: 1>, scalar_prefetch = 0 : i64, scratch_operands = 0 : i64, tpu.core_type = #tpu.core_type<tc>, window_params = [{transform_indices = @transform_0, window_bounds = array<i64: 16, 32>}, {pipeline_mode = #tpu.pipeline_mode<synchronous>, transform_indices = @transform_1, window_bounds = array<i64: 1, 32>}, {pipeline_mode = #tpu.pipeline_mode<synchronous>, transform_indices = @transform_2, window_bounds = array<i64: 1, 32>}, {pipeline_mode = #tpu.pipeline_mode<synchronous>, transform_indices = @transform_3, window_bounds = array<i64: 32, 64>}, {pipeline_mode = #tpu.pipeline_mode<synchronous>, transform_indices = @transform_4, window_bounds = array<i64: 1, 64>}, {pipeline_mode = #tpu.pipeline_mode<synchronous>, transform_indices = @transform_5, window_bounds = array<i64: 32, 64>}, {pipeline_mode = #tpu.pipeline_mode<synchronous>, transform_indices = @transform_6, window_bounds = array<i64: 1, 64>}, {pipeline_mode = #tpu.pipeline_mode<synchronous>, transform_indices = @transform_7, window_bounds = array<i64: 64, 32>}, {pipeline_mode = #tpu.pipeline_mode<synchronous>, transform_indices = @transform_8, window_bounds = array<i64: 1, 32>}, {transform_indices = @transform_9, window_bounds = array<i64: 16, 32>}]} {
    %c0 = arith.constant 0 : index
    %c0_0 = arith.constant 0 : index
    %0 = vector.load %arg1[%c0, %c0_0] : memref<16x32xf32, #tpu.memory_space<vmem>>, vector<16x32xf32>
    %c0_1 = arith.constant 0 : index
    %c0_2 = arith.constant 0 : index
    %1 = vector.load %arg2[%c0_1, %c0_2] : memref<1x32xf32, #tpu.memory_space<vmem>>, vector<1x32xf32>
    %c0_3 = arith.constant 0 : index
    %c0_4 = arith.constant 0 : index
    %2 = vector.load %arg3[%c0_3, %c0_4] : memref<1x32xf32, #tpu.memory_space<vmem>>, vector<1x32xf32>
    %cst = arith.constant dense<0.000000e+00> : vector<16xf32>
    %3 = vector.multi_reduction <add>, %0, %cst [1] : vector<16x32xf32> to vector<16xf32>
    %4 = vector.shape_cast %3 : vector<16xf32> to vector<16x1xf32>
    %cst_5 = arith.constant 3.200000e+01 : f32
    %5 = vector.broadcast %cst_5 : f32 to vector<16x1xf32>
    %6 = arith.divf %4, %5 : vector<16x1xf32>
    %7 = vector.broadcast %6 : vector<16x1xf32> to vector<16x32xf32>
    %8 = arith.subf %0, %7 : vector<16x32xf32>
    %9 = arith.mulf %8, %8 : vector<16x32xf32>
    %cst_6 = arith.constant dense<0.000000e+00> : vector<16xf32>
    %10 = vector.multi_reduction <add>, %9, %cst_6 [1] : vector<16x32xf32> to vector<16xf32>
    %11 = vector.shape_cast %10 : vector<16xf32> to vector<16x1xf32>
    %cst_7 = arith.constant 3.200000e+01 : f32
    %12 = vector.broadcast %cst_7 : f32 to vector<16x1xf32>
    %13 = arith.divf %11, %12 : vector<16x1xf32>
    %cst_8 = arith.constant 9.99999974E-6 : f32
    %14 = vector.broadcast %cst_8 : f32 to vector<16x1xf32>
    %15 = arith.addf %13, %14 : vector<16x1xf32>
    %16 = math.rsqrt %15 : vector<16x1xf32>
    %17 = vector.broadcast %16 : vector<16x1xf32> to vector<16x32xf32>
    %18 = arith.mulf %8, %17 : vector<16x32xf32>
    %19 = vector.broadcast %1 : vector<1x32xf32> to vector<16x32xf32>
    %20 = arith.mulf %18, %19 : vector<16x32xf32>
    %21 = vector.broadcast %2 : vector<1x32xf32> to vector<16x32xf32>
    %22 = arith.addf %20, %21 : vector<16x32xf32>
    %c0_9 = arith.constant 0 : index
    %c0_10 = arith.constant 0 : index
    %23 = vector.load %arg4[%c0_9, %c0_10] : memref<32x64xf32, #tpu.memory_space<vmem>>, vector<32x64xf32>
    %cst_11 = arith.constant dense<0.000000e+00> : vector<16x64xf32>
    %24 = tpu.matmul %22, %23, %cst_11 {dimension_numbers = #tpu.dot_dimension_numbers<[1], [0], [0], [1], [0, 0, 1, 1], [], []>} : vector<16x32xf32>, vector<32x64xf32>, vector<16x64xf32> -> vector<16x64xf32>
    %c0_12 = arith.constant 0 : index
    %c0_13 = arith.constant 0 : index
    %25 = vector.load %arg5[%c0_12, %c0_13] : memref<1x64xf32, #tpu.memory_space<vmem>>, vector<1x64xf32>
    %26 = vector.broadcast %25 : vector<1x64xf32> to vector<16x64xf32>
    %27 = arith.addf %24, %26 : vector<16x64xf32>
    %c0_14 = arith.constant 0 : index
    %c0_15 = arith.constant 0 : index
    %28 = vector.load %arg6[%c0_14, %c0_15] : memref<32x64xf32, #tpu.memory_space<vmem>>, vector<32x64xf32>
    %cst_16 = arith.constant dense<0.000000e+00> : vector<16x64xf32>
    %29 = tpu.matmul %22, %28, %cst_16 {dimension_numbers = #tpu.dot_dimension_numbers<[1], [0], [0], [1], [0, 0, 1, 1], [], []>} : vector<16x32xf32>, vector<32x64xf32>, vector<16x64xf32> -> vector<16x64xf32>
    %c0_17 = arith.constant 0 : index
    %c0_18 = arith.constant 0 : index
    %30 = vector.load %arg7[%c0_17, %c0_18] : memref<1x64xf32, #tpu.memory_space<vmem>>, vector<1x64xf32>
    %31 = vector.broadcast %30 : vector<1x64xf32> to vector<16x64xf32>
    %32 = arith.addf %29, %31 : vector<16x64xf32>
    %cst_19 = arith.constant 5.000000e-01 : f32
    %33 = vector.broadcast %cst_19 : f32 to vector<16x64xf32>
    %34 = arith.mulf %33, %32 : vector<16x64xf32>
    %cst_20 = arith.constant 0.707106769 : f32
    %35 = vector.broadcast %cst_20 : f32 to vector<16x64xf32>
    %36 = arith.mulf %32, %35 : vector<16x64xf32>
    %37 = math.erf %36 : vector<16x64xf32>
    %cst_21 = arith.constant 1.000000e+00 : f32
    %38 = vector.broadcast %cst_21 : f32 to vector<16x64xf32>
    %39 = arith.addf %38, %37 : vector<16x64xf32>
    %40 = arith.mulf %34, %39 : vector<16x64xf32>
    %41 = arith.mulf %27, %40 : vector<16x64xf32>
    %c0_22 = arith.constant 0 : index
    %c0_23 = arith.constant 0 : index
    %42 = vector.load %arg8[%c0_22, %c0_23] : memref<64x32xf32, #tpu.memory_space<vmem>>, vector<64x32xf32>
    %cst_24 = arith.constant dense<0.000000e+00> : vector<16x32xf32>
    %43 = tpu.matmul %41, %42, %cst_24 {dimension_numbers = #tpu.dot_dimension_numbers<[1], [0], [0], [1], [0, 0, 1, 1], [], []>} : vector<16x64xf32>, vector<64x32xf32>, vector<16x32xf32> -> vector<16x32xf32>
    %c0_25 = arith.constant 0 : index
    %c0_26 = arith.constant 0 : index
    %44 = vector.load %arg9[%c0_25, %c0_26] : memref<1x32xf32, #tpu.memory_space<vmem>>, vector<1x32xf32>
    %45 = vector.broadcast %44 : vector<1x32xf32> to vector<16x32xf32>
    %46 = arith.addf %43, %45 : vector<16x32xf32>
    %47 = arith.addf %46, %0 : vector<16x32xf32>
    %c0_27 = arith.constant 0 : index
    %c0_28 = arith.constant 0 : index
    %48 = vector.load %arg10[%c0_27, %c0_28] : memref<16x32xf32, #tpu.memory_space<vmem>>, vector<16x32xf32>
    tpu.vector_store %arg10[%c0_27, %c0_28], %47 {strides = array<i32>} : memref<16x32xf32, #tpu.memory_space<vmem>>, vector<16x32xf32>,
    return
  }
  func.func @transform_0(%arg0: i32) -> (i32, i32) {
    %c0_i32 = arith.constant 0 : i32
    %c0_i32_0 = arith.constant 0 : i32
    return %arg0, %c0_i32 : i32, i32
  }
  func.func @transform_1(%arg0: i32) -> (i32, i32) {
    %c0_i32 = arith.constant 0 : i32
    %c0_i32_0 = arith.constant 0 : i32
    %c0_i32_1 = arith.constant 0 : i32
    return %c0_i32, %c0_i32_0 : i32, i32
  }
  func.func @transform_2(%arg0: i32) -> (i32, i32) {
    %c0_i32 = arith.constant 0 : i32
    %c0_i32_0 = arith.constant 0 : i32
    %c0_i32_1 = arith.constant 0 : i32
    return %c0_i32, %c0_i32_0 : i32, i32
  }
  func.func @transform_3(%arg0: i32) -> (i32, i32) {
    %c0_i32 = arith.constant 0 : i32
    %c0_i32_0 = arith.constant 0 : i32
    %c0_i32_1 = arith.constant 0 : i32
    return %c0_i32, %c0_i32_0 : i32, i32
  }
  func.func @transform_4(%arg0: i32) -> (i32, i32) {
    %c0_i32 = arith.constant 0 : i32
    %c0_i32_0 = arith.constant 0 : i32
    %c0_i32_1 = arith.constant 0 : i32
    return %c0_i32, %c0_i32_0 : i32, i32
  }
  func.func @transform_5(%arg0: i32) -> (i32, i32) {
    %c0_i32 = arith.constant 0 : i32
    %c0_i32_0 = arith.constant 0 : i32
    %c0_i32_1 = arith.constant 0 : i32
    return %c0_i32, %c0_i32_0 : i32, i32
  }
  func.func @transform_6(%arg0: i32) -> (i32, i32) {
    %c0_i32 = arith.constant 0 : i32
    %c0_i32_0 = arith.constant 0 : i32
    %c0_i32_1 = arith.constant 0 : i32
    return %c0_i32, %c0_i32_0 : i32, i32
  }
  func.func @transform_7(%arg0: i32) -> (i32, i32) {
    %c0_i32 = arith.constant 0 : i32
    %c0_i32_0 = arith.constant 0 : i32
    %c0_i32_1 = arith.constant 0 : i32
    return %c0_i32, %c0_i32_0 : i32, i32
  }
  func.func @transform_8(%arg0: i32) -> (i32, i32) {
    %c0_i32 = arith.constant 0 : i32
    %c0_i32_0 = arith.constant 0 : i32
    %c0_i32_1 = arith.constant 0 : i32
    return %c0_i32, %c0_i32_0 : i32, i32
  }
  func.func @transform_9(%arg0: i32) -> (i32, i32) {
    %c0_i32 = arith.constant 0 : i32
    %c0_i32_0 = arith.constant 0 : i32
    return %arg0, %c0_i32 : i32, i32
  }
}

</mosaic_0001>

<bundles_post_ra>
// kernel: processor_forward.5
= control target key start
LH: loop header
LB: loop body
LE: loop exit
PB: predicated region body
PF: predicated region fallthrough
CT: control target
= control target key end

     0   :  { %vm36_vm0 = vcmask 261120   ;;  %vm285_vm1 = vcmask 523264   ;;  %s634_s0 = inlined_call_operand.vmem [shape: f32[16,32], index: 0, kind: input, shape index: {}]   ;;  %s635_s3 = inlined_call_operand.vmem [shape: f32[32,64], index: 3, kind: input, shape index: {}]   ;;  %s636_s5 = inlined_call_operand.vmem [shape: f32[32,64], index: 5, kind: input, shape index: {}]   ;;  %s637_s1 = inlined_call_operand.vmem [shape: f32[1,32], index: 1, kind: input, shape index: {}]   ;;  %s638_s2 = inlined_call_operand.vmem [shape: f32[1,32], index: 2, kind: input, shape index: {}]   ;;  %s639_s7 = inlined_call_operand.vmem [shape: f32[64,32], index: 7, kind: input, shape index: {}]   ;;  %s640_s6 = inlined_call_operand.vmem [shape: f32[1,64], index: 6, kind: input, shape index: {}]   ;;  %s641_s4 = inlined_call_operand.vmem [shape: f32[1,64], index: 4, kind: input, shape index: {}]   ;;  %s642_s8 = inlined_call_operand.vmem [shape: f32[1,32], index: 8, kind: input, shape index: {}]   ;;  %s643_s9 = inlined_call_operand.vmem [shape: f32[16,32], index: 9, kind: output, shape index: {}]  }
   0x1   :  { %v542_v0 = vld [vmem:[%s634_s0] sm:$0xff]  ;;  %v547_v1 = vld [vmem:[%s634_s0 + $0x8] sm:$0xff]  ;;  %v82_v16 = vld [vmem:[%s635_s3 + $0x10] sm:$0xff] }
   0x2   :  { %v37_v2 = vsel %vm36_vm0, %v542_v0, 0.0  ;;  %v40_v3 = vsel %vm36_vm0, %v547_v1, 0.0  ;;  %v80_v14 = vld [vmem:[%s635_s3] sm:$0xff]  ;;  %v81_v15 = vld [vmem:[%s635_s3 + $0x8] sm:$0xff]  ;;  %v83_v18 = vld [vmem:[%s635_s3 + $0x18] sm:$0xff] }
   0x3   :  { %38 = vadd.xlane.f32.xlu0 %v37_v2  ;;  %v449_v17 = vpack.c.bf16 %v81_v15, %v80_v14  ;;  %v453_v19 = vpack.c.bf16 %v83_v18, %v82_v16  ;;  %v172_v20 = vld [vmem:[%s636_s5] sm:$0xff]  ;;  %v173_v21 = vld [vmem:[%s636_s5 + $0x8] sm:$0xff]  ;;  %v174_v37 = vld [vmem:[%s636_s5 + $0x10] sm:$0xff] }
   0x4   :  { %v457_v22 = vpack.c.bf16 %v173_v21, %v172_v20  ;;  %v375_v30 = vld [vmem:[%s637_s1] ss:$0 sm:$0xff]  ;;  %v175_v38 = vld [vmem:[%s636_s5 + $0x18] sm:$0xff]  ;;  %v271_v43 = vld [vmem:[%s639_s7 + $0x8] sm:$0xff] }
   0x5   :  { %450 = vmatprep.subr.bf16.mxu1 %v449_v17  ;;  %v376_v32 = vld [vmem:[%s638_s2] ss:$0 sm:$0xff]  ;;  %v461_v41 = vpack.c.bf16 %v175_v38, %v174_v37  ;;  %v272_v45 = vld [vmem:[%s639_s7 + $0x10] sm:$0xff]  ;;  %v273_v46 = vld [vmem:[%s639_s7 + $0x18] sm:$0xff] }
   0x6   :  { %452 = vmatpush3.bf16.msra.mxu1 %v449_v17  ;;  %v270_v42 = vld [vmem:[%s639_s7] sm:$0xff]  ;;  %v469_v47 = vpack.c.bf16 %v273_v46, %v272_v45  ;;  %v275_v49 = vld [vmem:[%s639_s7 + $0x28] sm:$0xff]  ;;  %v276_v51 = vld [vmem:[%s639_s7 + $0x30] sm:$0xff] }
   0x7   :  { %41 = vadd.xlane.f32.xlu0 %v40_v3  ;;  %454 = vmatprep.subr.bf16.mxu1 %v453_v19  ;;  %v465_v44 = vpack.c.bf16 %v271_v43, %v270_v42  ;;  %v274_v48 = vld [vmem:[%s639_s7 + $0x20] sm:$0xff]  ;;  %v277_v52 = vld [vmem:[%s639_s7 + $0x38] sm:$0xff] }
   0x8   :  { %v473_v50 = vpack.c.bf16 %v275_v49, %v274_v48  ;;  %v477_v53 = vpack.c.bf16 %v277_v52, %v276_v51  ;;  %v380_v56 = vld [vmem:[%s640_s6] ss:$0 sm:$0xff] }
   0x9   :  { %466 = vmatprep.subr.bf16.mxu0 %v465_v44  ;;  %v377_v2 = vld [vmem:[%s641_s4] ss:$0 sm:$0xff] }
   0xa   :  { %456 = vmatpush3.bf16.msra.mxu1 %v453_v19  ;;  %468 = vmatpush3.bf16.msra.mxu0 %v465_v44  ;;  %v383_v14 = vld [vmem:[%s642_s8] ss:$0 sm:$0xff] }
   0xb   :  { %458 = vmatprep.subr.bf16.mxu1 %v457_v22  ;;  %470 = vmatprep.subr.bf16.mxu0 %v469_v47 }
   0xe   :  { %472 = vmatpush3.bf16.msra.mxu0 %v469_v47 }
   0xf   :  { %474 = vmatprep.subr.bf16.mxu0 %v473_v50 }
  0x12   :  { %476 = vmatpush3.bf16.msra.mxu0 %v473_v50 }
  0x13   :  { %478 = vmatprep.subr.bf16.mxu0 %v477_v53 }
  0x16   :  { %480 = vmatpush3.bf16.msra.mxu0 %v477_v53 }
  0x90   :  { %v39_v4 = vpop.xlane.xlu0 %38 }
  0x91   :  { %v44_v5 = vmul.f32 0.03125, %v39_v4 }
  0x93   :  { %v46_v6 = vsub.f32 %v542_v0, %v44_v5 }
  0x94   :  { %v42_v7 = vpop.xlane.xlu0 %41 }
  0x95   :  { %v45_v8 = vmul.f32 0.03125, %v42_v7  ;;  %v48_v9 = vmul.f32 %v46_v6, %v46_v6 }
  0x97   :  { %v47_v10 = vsub.f32 %v547_v1, %v45_v8  ;;  %v50_v11 = vsel %vm36_vm0, %v48_v9, 0.0 }
  0x98   :  { %51 = vadd.xlane.f32.xlu1 %v50_v11 }
  0x99   :  { %v49_v12 = vmul.f32 %v47_v10, %v47_v10 }
  0x9b   :  { %v53_v13 = vsel %vm36_vm0, %v49_v12, 0.0 }
  0x9c   :  { %54 = vadd.xlane.f32.xlu1 %v53_v13 }
 0x125   :  { %v52_v23 = vpop.xlane.xlu1 %51 }
 0x126   :  { %v56_v24 = vmul.f32 0.03125, %v52_v23 }
 0x128   :  { %v58_v25 = vadd.f32 1e-05, %v56_v24 }
 0x129   :  { %v55_v26 = vpop.xlane.xlu1 %54 }
 0x12a   :  { %481 = vrsqrt.f32 %v58_v25  ;;  %v57_v27 = vmul.f32 0.03125, %v55_v26 }
 0x12c   :  { %v59_v28 = vadd.f32 1e-05, %v57_v27 }
 0x12e   :  { %483 = vrsqrt.f32 %v59_v28 }
 0x134   :  { %v482_v29 = vpop.eup %481 }
 0x135   :  { %v62_v31 = vmul.f32 %v482_v29, %v46_v6 }
 0x137   :  { %v70_v33 = vmul.f32 %v375_v30, %v62_v31 }
 0x138   :  { %v484_v34 = vpop.eup %483 }
 0x139   :  { %v63_v35 = vmul.f32 %v484_v34, %v47_v10  ;;  %v78_v36 = vadd.f32 %v376_v32, %v70_v33 }
 0x13b   :  { %v71_v39 = vmul.f32 %v375_v30, %v63_v35  ;;  %416 = vmatprep.mubr.msk.f32.mxu1 %vm36_vm0, %v78_v36 }
 0x13d   :  { %v79_v40 = vadd.f32 %v376_v32, %v71_v39 }
 0x13f   :  { %417 = vmatmul.mubr.msk.f32.vlgmr.msra.gmra.mrb[0].mxu1 %vm36_vm0, %v79_v40 }
 0x140   :  { %460 = vmatpush3.bf16.msra.mxu1 %v457_v22  ;;  %427 = vmatprep.mubr.msk.f32.mxu1 %vm36_vm0, %v78_v36 }
 0x141   :  { %462 = vmatprep.subr.bf16.mxu1 %v461_v41 }
 0x144   :  { %464 = vmatpush3.bf16.msra.mxu1 %v461_v41 }
 0x147   :  { %428 = vmatmul.mubr.msk.f32.vlgmr.msra.gmra.mrb[2].mxu1 %vm36_vm0, %v79_v40 }
 0x212   :  { %v418_v54 = vpop.f32.mrb[0].mxu1 }
 0x213   :  { %v163_v55 = vpop.f32.mrb[1].mxu1  ;;  %v169_v8 = vadd.f32 %v418_v54, %v377_v2 }
 0x214   :  { %v164_v10 = vadd.f32 %v377_v2, %v163_v55 }
 0x21a   :  { %v429_v57 = vpop.f32.mrb[2].mxu1 }
 0x21b   :  { %v255_v58 = vadd.f32 %v429_v57, %v380_v56  ;;  %v249_v59 = vpop.f32.mrb[3].mxu1 }
 0x21c   :  { %v250_v60 = vadd.f32 %v380_v56, %v249_v59 }
 0x21d   :  { %v261_v61 = vmul.f32 0.70710677, %v255_v58  ;;  %v259_v4 = vmul.f32 0.5, %v255_v58 }
 0x21e   :  { %v260_v62 = vmul.f32 0.70710677, %v250_v60  ;;  %v258_v6 = vmul.f32 0.5, %v250_v60 }
 0x21f   :  { %485 = verf.f32 %v261_v61 }
 0x220   :  { %487 = verf.f32 %v260_v62 }
 0x229   :  { %v486_v63 = vpop.eup %485 }
 0x22a   :  { %v488_v3 = vpop.eup %487  ;;  %v265_v5 = vadd.f32 1.0, %v486_v63 }
 0x22b   :  { %v264_v7 = vadd.f32 1.0, %v488_v3 }
 0x22c   :  { %v267_v9 = vmul.f32 %v265_v5, %v259_v4 }
 0x22d   :  { %v266_v11 = vmul.f32 %v264_v7, %v258_v6 }
 0x22e   :  { %v269_v12 = vmul.f32 %v267_v9, %v169_v8 }
 0x22f   :  { %v268_v13 = vmul.f32 %v266_v11, %v164_v10 }
 0x231   :  { %446 = vmatprep.mubr.msk.f32.mxu0 %vm285_vm1, %v268_v13 }
 0x232   :  { %447 = vmatmul.mubr.msk.f32.vlgmr.msra.gmra.mrb[0].mxu0 %vm285_vm1, %v269_v12 }
 0x305   :  { %v448_v15 = vpop.f32.mrb[0].mxu0 }
 0x306   :  { %v364_v16 = vadd.f32 %v448_v15, %v383_v14  ;;  %v358_v17 = vpop.f32.mrb[1].mxu0 }
 0x307   :  { %v359_v18 = vadd.f32 %v383_v14, %v358_v17 }
 0x308   :  { %v368_v19 = vadd.f32 %v364_v16, %v547_v1 }
 0x309   :  { %v367_v20 = vadd.f32 %v359_v18, %v542_v0 }
 0x30a   :  { %370 = vst.msk [vmem:[%s643_s9 + $0x8] sm:$0xff] %vm36_vm0, %v368_v19 }
 0x30b   :  { %369 = vst.msk [vmem:[%s643_s9] sm:$0xff] %vm36_vm0, %v367_v20 }

// kernel: processor_forward.4
= control target key start
LH: loop header
LB: loop body
LE: loop exit
PB: predicated region body
PF: predicated region fallthrough
CT: control target
= control target key end

     0   :  { %12 = vsyncpa [#allocation3], 0  ;;  %s1886_s0 = inlined_call_operand.hbm [shape: f32[2,8,32], index: 0, kind: input, shape index: {}]   ;;  %s1887_s1 = inlined_call_operand.vmem [shape: f32[1,32], index: 1, kind: input, shape index: {}]   ;;  %s1888_s2 = inlined_call_operand.vmem [shape: f32[1,32], index: 2, kind: input, shape index: {}]   ;;  %s1889_s3 = inlined_call_operand.vmem [shape: f32[32,96], index: 3, kind: input, shape index: {}]   ;;  %s1890_s4 = inlined_call_operand.vmem [shape: f32[1,96], index: 4, kind: input, shape index: {}]   ;;  %s1891_s5 = inlined_call_operand.hbm [shape: f32[32,32], index: 5, kind: input, shape index: {}]   ;;  %s1892_s6 = inlined_call_operand.vmem [shape: f32[1,32], index: 6, kind: input, shape index: {}]   ;;  %s1893_s7 = inlined_call_operand.vmem [shape: f32[2,8,32], index: 7, kind: output, shape index: {}]  }
   0x1   :  { %14 = vsyncpa [#allocation3 + $0x1], 0 }
   0x2   :  { %15 = vsyncpa [#allocation5], 0  ;;  %s1643_s24 = smov 0   ;;  %s1645_s25 = smov 0  }
   0x3   :  { %s1647_s26 = smov 0   ;;  %s1649_s27 = smov 0  }
   0x4 LB: > { %s1662_s28 = sadd.s32 4294967295, %s1580_s27   ;;  %p41_p0 = scmp.ne.s32.totalorder %s1572_s25, %s1568_s24  ;;  %s1580_s27 = sphi %s1649_s27, %s1908_s27   ;;  %s1576_s26 = sphi %s1647_s26, %s1907_s26   ;;  %s1572_s25 = sphi %s1645_s25, %s1906_s25   ;;  %s1568_s24 = sphi %s1643_s24, %s1905_s24  }
   0x5   : > { %p1894_p1 = scmp.eq.s32.totalorder %s1662_s28, 0  ;;  %p1268_p2 = scmp.ge.s32.totalorder %s1580_s27, 1 }
   0x6   : > { %p204_p3 = scmp.lt.s32.totalorder %s1580_s27, 3  ;;  %s1582_s8 = smov [#allocation4]  }
   0x7   : > { %p1670_p4 = por %p1894_p1, %p41_p0  ;;  %s228_s9 = sshll.u32 %s1582_s8, 4  ;;  %s229_s9 = int_to_ptr.vmem [resolvable:$true] %s228_s9 }
   0x8   : > { %p1674_p5 = pnand %p1268_p2, %p204_p3  ;;  %s1687_s11 = sadd.s32 1, %s1580_s27  }
   0x9   : > { %s1897_s29 = scalar_select %p1670_p4, 1, 0 }
   0xa   : > { %s1898_s30 = scalar_select %p1674_p5, 1, 0 }
   0xb   : > { %p1403_p6 = pneg %p1674_p5  ;;  %s28_s12 = sadd.s32 1, %s1576_s26 }
   0xc   : > { %s25_s13 = ssub.s32 %s1580_s27, %s1687_s11  ;;  %s1484_s16 = scalar_lea.hbm %s1891_s5, 512 }
   0xd   : > { %p1682_p7 = pnand %p1403_p6, %p1894_p1  ;;  %p1485_p8 = scmp.ne.s32.totalorder %s1891_s5, %s1484_s16 }
   0xe   : > { %p1491_p12 = scmp.lt.u32.totalorder %s1484_s16, %s1891_s5 }
   0xf   : > { %p1486_p9 = pneg %p1682_p7 }
  0x11   : > { %p1487_p10 = pnand %p1486_p9, %p1485_p8 }
  0x13   : > { %p1488_p11 = pneg %p1487_p10 }
  0x15   : > { %p1493_p13 = pnand %p1491_p12, %p1488_p11 }
  0x17   : > { %1496 = shalt.err (!%p1493_p13)
}
  0x18   : > { %s1497_s21 = scalar_lea.vmem %s229_s9, 512  ;;  %p1505_p6 = scmp.lt.s32.totalorder %s229_s9, %s229_s9 }
  0x19   : > { %p1498_p0 = scmp.ne.s32.totalorder %s229_s9, %s1497_s21  ;;  %p1506_p1 = scmp.lt.s32.totalorder %s1497_s21, %s1497_s21 }
  0x1b   : > { %p1500_p2 = pnand %p1498_p0, %p1486_p9  ;;  %p1507_p4 = por %p1506_p1, %p1505_p6 }
  0x1d   : > { %p1501_p3 = pneg %p1500_p2 }
  0x1f   : > { %p1508_p5 = pnand %p1507_p4, %p1501_p3 }
  0x21   : > { %1511 = shalt.err (!%p1508_p5)
}
  0x22   : > { %s1583_s22 = smov 128   ;;  %s1584_s23 = smov 8  }
  0x23   : > { %1406 = dma.hbm_to_vmem [thread:$0]  (!%p1682_p7), %s1891_s5, 512, %s229_s9, [#allocation5], %s1583_s22, %s1583_s22, %s1584_s23  }
  0x24   : > { %p26_p8 = scmp.eq.s32.totalorder %s25_s13, 0  ;;  %p35_p9 = scmp.ne.s32.totalorder %s1576_s26, %s1572_s25 }
  0x25   : > { %p36_p1 = scmp.eq.s32.totalorder %s1580_s27, 0  ;;  %p1412_p4 = scmp.lt.s32.totalorder %s1580_s27, 2 }
  0x26   : > { %s1713_s14 = scalar_select %p26_p8, %s1576_s26, %s28_s12  }
  0x27   : > { %p37_p5 = por %p36_p1, %p35_p9  ;;  %s245_s15 = sand.u32 1, %s1576_s26  }
  0x28   : > { %s1271_s16 = sshll.u32 %s245_s15, 3  ;;  %s1272_s17 = sshll.u32 %s1580_s27, 7 }
  0x29   : > { %s1720_s20 = scalar_lea.hbm %s1886_s0, %s1272_s17  ;;  %s249_s9 = scalar_lea.vmem [#allocation2], %s1271_s16 }
  0x2a   : > { %s256_s10 = sshll.u32 %s249_s9, 4  ;;  %p1724_p7 = pnand %p1412_p4, %p37_p5  ;;  %s1722_s10 = int_to_ptr.vmem [resolvable:$true] %s256_s10 }
  0x2b   : > { %s246_s27 = scalar_lea.sflag [#allocation3], %s245_s15  ;;  %s1512_s13 = scalar_lea.hbm %s1720_s20, 128 }
  0x2c   : > { %p1513_p10 = scmp.ne.s32.totalorder %s1720_s20, %s1512_s13  ;;  %p1514_p11 = pneg %p1724_p7 }
  0x2d   : > { %s1517_s23 = scalar_lea.hbm %s1886_s0, 256  ;;  %p1518_p0 = scmp.lt.u32.totalorder %s1720_s20, %s1886_s0 }
  0x2e   : > { %p1515_p12 = pnand %p1514_p11, %p1513_p10  ;;  %p1519_p2 = scmp.lt.u32.totalorder %s1517_s23, %s1512_s13 }
  0x2f   : > { %p1521_p6 = scmp.lt.u32.totalorder %s1512_s13, %s1720_s20 }
  0x30   : > { %p1516_p13 = pneg %p1515_p12  ;;  %p1520_p3 = por %p1519_p2, %p1518_p0 }
  0x32   : > { %p1522_p8 = por %p1521_p6, %p1520_p3 }
  0x34   : > { %p1523_p9 = pnand %p1522_p8, %p1516_p13 }
  0x36   : > { %1526 = shalt.err (!%p1523_p9)
}
  0x37   : > { %s1527_s15 = scalar_lea.vmem %s1722_s10, 128  ;;  %s1585_s16 = smov [#allocation2]  }
  0x38   : > { %p1528_p1 = scmp.ne.s32.totalorder %s1722_s10, %s1527_s15  ;;  %s1532_s17 = sshll.u32 %s1585_s16, 4  ;;  %s1533_s17 = int_to_ptr.vmem [resolvable:$false] %s1532_s17 }
  0x39   : > { %s1534_s18 = scalar_lea.vmem %s1533_s17, 256  ;;  %p1535_p10 = scmp.lt.s32.totalorder %s1722_s10, %s1533_s17 }
  0x3a   : > { %p1530_p4 = pnand %p1528_p1, %p1514_p11  ;;  %p1536_p12 = scmp.lt.s32.totalorder %s1534_s18, %s1527_s15 }
  0x3c   : > { %p1531_p5 = pneg %p1530_p4  ;;  %p1537_p0 = por %p1536_p12, %p1535_p10 }
  0x3e   : > { %p1538_p2 = pnand %p1537_p0, %p1531_p5 }
  0x40   : > { %1541 = shalt.err (!%p1538_p2)
}
  0x41   : > { %1410 = dma.hbm_to_vmem [thread:$0]  (!%p1724_p7), %s1720_s20, 128, %s1722_s10, %s246_s27  }
  0x42   : > { %p1901_p13 = scmp.ne.s32.totalorder %s1898_s30, 0 }
  0x43   : > { %s267_s19 = sand.u32 (!%p1901_p13), 1, %s1572_s25   ;;  %p1902_p11 = scmp.ne.s32.totalorder (!%p1901_p13), %s1897_s29, 0 }
  0x44   : > { %265 = sbr.rel (%p1901_p13) target bundleno = 2028 (0x7ec), region = 48  ;;  %s1274_s9 = sshll.u32 (!%p1901_p13), %s267_s19, 3 }
  0x45   : > { %s268_s13 = scalar_lea.sflag (!%p1901_p13), [#allocation3], %s267_s19  ;;  %s271_s21 = scalar_lea.vmem (!%p1901_p13), [#allocation2], %s1274_s9 }
  0x4b   : > { %1559 = dma.done.wait (%p1902_p11), %s268_s13, 128  }
  0x4c   : > { %1561 = vsyncadd (%p1902_p11), %s268_s13, 4294967168  ;;  %p1903_p3 = scmp.eq.s32.totalorder %s1662_s28, 0 }
  0x4e   : > { %1563 = dma.done.wait (%p1903_p3), [#allocation5], 512   ;;  %p1904_p6 = pmov %p1903_p3 }
  0x4f   : > { %vm312_vm0 = vcmask 261120   ;;  %v1764_v0 = vld [vmem:[%s271_s21] sm:$0xff]  ;;  %v343_v9 = vld [vmem:[%s1889_s3 + $0x10] sm:$0xff]  ;;  %v1586_v10 = vmov 0.0|0.0   ;;  %v344_v12 = vld [vmem:[%s1889_s3 + $0x18] sm:$0xff]  ;;  %vm1587_vm1 = vmmov 0  }
  0x50   : > { %1565 = vsyncadd (%p1904_p6), [#allocation5], 4294966784  ;;  %v313_v1 = vsel %vm312_vm0, %v1764_v0, 0.0  ;;  %v341_v7 = vld [vmem:[%s1889_s3] sm:$0xff]  ;;  %v342_v8 = vld [vmem:[%s1889_s3 + $0x8] sm:$0xff]  ;;  %1385 = vmatprep.subr.bf16.mxu0 %v1586_v10  ;;  %v1588_v13 = vmov 0.0   ;;  %v1389_v14 = vpack.c.bf16 %v344_v12, %v343_v9 }
  0x51   : > { %314 = vadd.xlane.f32.xlu0 %v313_v1  ;;  %v1386_v11 = vpack.c.bf16 %v342_v8, %v341_v7  ;;  %1331 = vmatprep.mubr.msk.f32.mxu0 %vm1587_vm1, %v1588_v13  ;;  %v1277_v19 = vld [vmem:[%s1887_s1] ss:$0 sm:$0xff]  ;;  %s1589_s19 = smov 64   ;;  %s1590_s9 = smov 96   ;;  %vm428_vm2 = vcmask 64512   ;;  %vm1102_vm3 = vcmask 130048  }
  0x52   : > { %1334 = vmatprep.subr.mxu1 %v1588_v13  ;;  %1336 = vmatprep.mubr.msk.f32.mxu1 %vm1587_vm1, %v1588_v13  ;;  %v1278_v21 = vld [vmem:[%s1888_s2] ss:$0 sm:$0xff]  ;;  %s1591_s13 = smov 88   ;;  %s1592_s21 = smov 120   ;;  %vm1104_vm4 = vcmask 195584  }
  0x53   : > { %1387 = vmatpush3.bf16.msra.mxu0 %v1386_v11  ;;  %v1279_v24 = vld [vmem:[%s1890_s4] ss:$0 sm:$0xff]  ;;  %s1593_s29 = smov 80   ;;  %s1594_s30 = smov 72  }
  0x54   : > { %1388 = vmatprep.subr.bf16.mxu0 %v1586_v10  ;;  %s1595_s20 = smov 104   ;;  %s1596_s10 = smov 112  }
  0x55   : > { %s1597_s12 = smov 48   ;;  %s1598_s27 = smov 56  }
  0x56   : > { %s1599_s22 = smov 40   ;;  %s1600_s23 = smov 8  }
  0x57   : > { %1390 = vmatpush3.bf16.msra.mxu0 %v1389_v14  ;;  %s1601_s24 = smov 16   ;;  %s1602_s8 = smov 24  }
  0x58   : > { %1354 = vmatprep.subr.mxu0 %v1588_v13  ;;  %p305_p7 = scmp.lt.s32.totalorder %s1662_s28, 1 }
  0x5a   : > { %s1910_s28 = smov (!%p305_p7, %s1662_s28), 1 }
  0x5b   : > { %s1276_s17 = sshll.u32 %s1910_s28, 3 }
  0xde   : > { %v315_v2 = vpop.xlane.xlu0 %314 }
  0xdf   : > { %v317_v3 = vmul.f32 0.03125, %v315_v2 }
  0xe1   : > { %v318_v4 = vsub.f32 %v1764_v0, %v317_v3 }
  0xe3   : > { %v319_v5 = vmul.f32 %v318_v4, %v318_v4 }
  0xe5   : > { %v320_v6 = vsel %vm312_vm0, %v319_v5, 0.0 }
  0xe6   : > { %321 = vadd.xlane.f32.xlu0 %v320_v6 }
 0x173   : > { %v322_v15 = vpop.xlane.xlu0 %321 }
 0x174   : > { %v323_v16 = vmul.f32 0.03125, %v322_v15 }
 0x176   : > { %v324_v17 = vadd.f32 1e-05, %v323_v16 }
 0x178   : > { %1466 = vrsqrt.f32 %v324_v17 }
 0x182   : > { %v1467_v18 = vpop.eup %1466 }
 0x183   : > { %v326_v20 = vmul.f32 %v1467_v18, %v318_v4  ;;  %v1106_v18 = vld [vmem:[#allocation4] sm:$0xff] }
 0x185   : > { %v333_v22 = vmul.f32 %v1277_v19, %v326_v20  ;;  %v1107_v19 = vld [vmem:[#allocation4 + $0x8] sm:$0xff] }
 0x186   : > { %v1392_v20 = vpack.c.bf16 %v1107_v19, %v1106_v18 }
 0x187   : > { %v340_v23 = vadd.f32 %v1278_v21, %v333_v22  ;;  %v1108_v21 = vld [vmem:[#allocation4 + $0x10] sm:$0xff]  ;;  %v1109_v22 = vld [vmem:[#allocation4 + $0x18] sm:$0xff] }
 0x189   : > { %1332 = vmatmul.mubr.msk.f32.vlgmr.msra.gmra.mrb[0].mxu0 %vm312_vm0, %v340_v23 }
 0x18a   : > { %1356 = vmatprep.mubr.msk.f32.mxu0 %vm1587_vm1, %v1588_v13 }
 0x25c   : > { %v421_v25 = vpop.f32.mrb[0].mxu0 }
 0x25d   : > { %v1802_v26 = vadd.f32 %v1279_v24, %v421_v25  ;;  %v1333_v27 = vpop.f32.mrb[1].mxu0  ;;  %v1395_v24 = vpack.c.bf16 %v1109_v22, %v1108_v21 }
 0x25f   : > { %514 = vrot.lane.b32.xlu0 %v1802_v26, %s1589_s19  ;;  %426 = vrot.lane.b32.xlu1 %v1802_v26, %s1590_s9  ;;  %s308_s9 = scalar_lea.vmem %s1893_s7, %s1276_s17 }
 0x263   : > { %593 = vrot.lane.b32.xlu0 %v1802_v26, %s1591_s13 }
 0x267   : > { %591 = vrot.lane.b32.xlu0 %v1802_v26, %s1592_s21 }
 0x26b   : > { %759 = vrot.lane.b32.xlu0 %v1802_v26, %s1593_s29 }
 0x26f   : > { %925 = vrot.lane.b32.xlu0 %v1802_v26, %s1594_s30 }
 0x273   : > { %923 = vrot.lane.b32.xlu0 %v1802_v26, %s1595_s20 }
 0x2d1   : > { %v515_v28 = vpop.permute.xlu0 %514  ;;  %v427_v29 = vpop.permute.xlu1 %426 }
 0x2d2   : > { %1335 = vmatpush3.xpose.msk.msra.mxu1 %vm428_vm2, %v427_v29 }
 0x2d3   : > { %1339 = vmatprep.subr.mxu1 %v1588_v13 }
 0x2d5   : > { %v594_v30 = vpop.permute.xlu0 %593  ;;  %1337 = vmatmul.mubr.msk.f32.vlgmr.msra.gmra.mrb[0].mxu1 %vm428_vm2, %v1802_v26 }
 0x2d6   : > { %1340 = vmatpush3.msra.mxu1 %v515_v28  ;;  %1341 = vmatprep.mubr.msk.f32.mxu1 %vm1587_vm1, %v1588_v13 }
 0x2d7   : > { %1344 = vmatprep.subr.mxu1 %v1588_v13 }
 0x2d9   : > { %v592_v31 = vpop.permute.xlu0 %591 }
 0x2dd   : > { %v760_v32 = vpop.permute.xlu0 %759 }
 0x2de   : > { %1355 = vmatpush3.xpose.msk.msra.mxu0 %vm428_vm2, %v760_v32 }
 0x2df   : > { %1364 = vmatprep.subr.mxu0 %v1588_v13 }
 0x2e1   : > { %v926_v39 = vpop.permute.xlu0 %925 }
 0x2e5   : > { %v924_v42 = vpop.permute.xlu0 %923 }
 0x3a8   : > { %v499_v33 = vpop.f32.mrb[0].mxu1 }
 0x3a9   : > { %v503_v34 = vmul.f32 0.35355338, %v499_v33  ;;  %v1338_v35 = vpop.f32.mrb[1].mxu1 }
 0x3ab   : > { %v504_v36 = vsel %vm428_vm2, %v503_v34, -inf }
 0x3ac   : > { %505 = vmax.xlane.f32.xlu1 %v504_v36 }
 0x3bd   : > { %757 = vrot.lane.b32.xlu1 %v1802_v26, %s1596_s10 }
 0x439   : > { %v506_v37 = vpop.xlane.xlu1 %505 }
 0x43a   : > { %v507_v38 = vsub.f32 %v503_v34, %v506_v37 }
 0x43c   : > { %v508_v40 = vmul.f32 1.442695, %v507_v38 }
 0x43d   : > { %v758_v41 = vpop.permute.xlu1 %757 }
 0x43e   : > { %1468 = vpow2.f32 %v508_v40  ;;  %1357 = vmatmul.mubr.msk.f32.vlgmr.msra.gmra.mrb[2].mxu0 %vm428_vm2, %v758_v41 }
 0x43f   : > { %1365 = vmatpush3.xpose.msk.msra.mxu0 %vm428_vm2, %v926_v39  ;;  %1366 = vmatprep.mubr.msk.f32.mxu0 %vm1587_vm1, %v1588_v13 }
 0x440   : > { %1391 = vmatprep.subr.bf16.mxu0 %v1586_v10 }
 0x442   : > { %1367 = vmatmul.mubr.msk.f32.vlgmr.msra.gmra.mrb[4].mxu0 %vm428_vm2, %v924_v42 }
 0x443   : > { %1382 = vmatprep.mubr.msk.f32.mxu0 %vm1587_vm1, %v1588_v13  ;;  %1393 = vmatpush3.bf16.msra.mxu0 %v1392_v20 }
 0x444   : > { %1394 = vmatprep.subr.bf16.mxu0 %v1586_v10 }
 0x447   : > { %1396 = vmatpush3.bf16.msra.mxu0 %v1395_v24 }
 0x448   : > { %v1469_v43 = vpop.eup %1468 }
 0x449   : > { %1342 = vmatmul.mubr.msk.f32.vlgmr.msra.gmra.mrb[2].mxu1 %vm428_vm2, %v1469_v43  ;;  %v510_v9 = vsel %vm428_vm2, %v1469_v43, 0.0 }
 0x44a   : > { %1345 = vmatpush3.xpose.msk.msra.mxu1 %vm428_vm2, %v594_v30  ;;  %1346 = vmatprep.mubr.msk.f32.mxu1 %vm1587_vm1, %v1588_v13 }
 0x44b   : > { %1349 = vmatprep.subr.mxu1 %v1588_v13 }
 0x44d   : > { %1347 = vmatmul.mubr.msk.f32.vlgmr.msra.gmra.mrb[4].mxu1 %vm428_vm2, %v592_v31 }
 0x44e   : > { %1351 = vmatprep.mubr.msk.f32.mxu1 %vm1587_vm1, %v1588_v13 }
 0x511   : > { %v831_v44 = vpop.f32.mrb[2].mxu0 }
 0x512   : > { %v835_v45 = vmul.f32 0.35355338, %v831_v44  ;;  %v1358_v46 = vpop.f32.mrb[3].mxu0  ;;  %v1293_v44 = vld [vmem:[%s1892_s6] ss:$0 sm:$0xff] }
 0x514   : > { %v836_v47 = vsel %vm428_vm2, %v835_v45, -inf }
 0x515   : > { %837 = vmax.xlane.f32.xlu1 %v836_v47  ;;  %v997_v48 = vpop.f32.mrb[4].mxu0 }
 0x516   : > { %v1001_v49 = vmul.f32 0.35355338, %v997_v48  ;;  %v1368_v50 = vpop.f32.mrb[5].mxu0 }
 0x518   : > { %v1002_v51 = vsel %vm428_vm2, %v1001_v49, -inf }
 0x519   : > { %1003 = vmax.xlane.f32.xlu0 %v1002_v51 }
 0x51c   : > { %v1840_v52 = vpop.f32.mrb[2].mxu1 }
 0x51d   : > { %v1343_v53 = vpop.f32.mrb[3].mxu1 }
 0x520   : > { %v665_v54 = vpop.f32.mrb[4].mxu1 }
 0x521   : > { %v669_v55 = vmul.f32 0.35355338, %v665_v54  ;;  %v1348_v56 = vpop.f32.mrb[5].mxu1 }
 0x523   : > { %v670_v57 = vsel %vm428_vm2, %v669_v55, -inf }
 0x524   : > { %671 = vmax.xlane.f32.xlu0 %v670_v57 }
 0x526   : > { %846 = vrot.lane.b32.xlu1 %v1802_v26, %s1597_s12 }
 0x53a   : > { %680 = vrot.lane.b32.xlu0 %v1802_v26, %s1598_s27 }
 0x53e   : > { %1012 = vrot.lane.b32.xlu0 %v1802_v26, %s1599_s22 }
 0x5a2   : > { %v838_v58 = vpop.xlane.xlu1 %837 }
 0x5a3   : > { %v839_v59 = vsub.f32 %v835_v45, %v838_v58 }
 0x5a5   : > { %v840_v60 = vmul.f32 1.442695, %v839_v59 }
 0x5a6   : > { %v1004_v61 = vpop.xlane.xlu0 %1003  ;;  %v847_v12 = vpop.permute.xlu1 %846 }
 0x5a7   : > { %1470 = vpow2.f32 %v840_v60  ;;  %v1005_v62 = vsub.f32 %v1001_v49, %v1004_v61 }
 0x5a9   : > { %v1006_v63 = vmul.f32 1.442695, %v1005_v62 }
 0x5ab   : > { %1472 = vpow2.f32 %v1006_v63 }
 0x5b1   : > { %v1471_v1 = vpop.eup %1470  ;;  %v672_v2 = vpop.xlane.xlu0 %671 }
 0x5b2   : > { %v673_v3 = vsub.f32 %v669_v55, %v672_v2  ;;  %v842_v4 = vsel %vm428_vm2, %v1471_v1, 0.0 }
 0x5b3   : > { %843 = vadd.xlane.f32.xlu0 %v842_v4 }
 0x5b4   : > { %v674_v5 = vmul.f32 1.442695, %v673_v3 }
 0x5b5   : > { %v1473_v6 = vpop.eup %1472  ;;  %v681_v7 = vpop.permute.xlu0 %680 }
 0x5b6   : > { %1474 = vpow2.f32 %v674_v5  ;;  %1350 = vmatpush3.msra.mxu1 %v681_v7  ;;  %v1008_v8 = vsel %vm428_vm2, %v1473_v6, 0.0 }
 0x5b7   : > { %1009 = vadd.xlane.f32.xlu0 %v1008_v8  ;;  %1359 = vmatprep.subr.mxu1 %v1588_v13 }
 0x5b9   : > { %v1013_v15 = vpop.permute.xlu0 %1012 }
 0x5bb   : > { %511 = vadd.xlane.f32.xlu0 %v510_v9 }
 0x5c0   : > { %v1475_v11 = vpop.eup %1474 }
 0x5c1   : > { %1352 = vmatmul.mubr.msk.f32.vlgmr.msra.gmra.mrb[6].mxu1 %vm428_vm2, %v1475_v11  ;;  %v676_v14 = vsel %vm428_vm2, %v1475_v11, 0.0 }
 0x5c2   : > { %1360 = vmatpush3.msra.mxu1 %v847_v12  ;;  %677 = vadd.xlane.f32.xlu1 %v676_v14 }
 0x5c3   : > { %1361 = vmatprep.mubr.msk.f32.mxu1 %vm1587_vm1, %v1588_v13  ;;  %1369 = vmatprep.subr.mxu1 %v1588_v13 }
 0x5c5   : > { %1362 = vmatmul.mubr.msk.f32.vlgmr.msra.gmra.mrb[8].mxu1 %vm428_vm2, %v1471_v1 }
 0x5c6   : > { %1370 = vmatpush3.msra.mxu1 %v1013_v15  ;;  %1371 = vmatprep.mubr.msk.f32.mxu1 %vm1587_vm1, %v1588_v13 }
 0x5c9   : > { %1372 = vmatmul.mubr.msk.f32.vlgmr.msra.gmra.mrb[10].mxu1 %vm428_vm2, %v1473_v6 }
 0x640   : > { %v844_v17 = vpop.xlane.xlu0 %843 }
 0x644   : > { %v1010_v23 = vpop.xlane.xlu0 %1009 }
 0x648   : > { %v512_v35 = vpop.xlane.xlu0 %511 }
 0x64f   : > { %v678_v16 = vpop.xlane.xlu1 %677 }
 0x650   : > { %1476 = vrcp.f32 %v678_v16 }
 0x651   : > { %1478 = vrcp.f32 %v844_v17 }
 0x652   : > { %1480 = vrcp.f32 %v1010_v23 }
 0x653   : > { %1482 = vrcp.f32 %v512_v35 }
 0x65a   : > { %v1477_v25 = vpop.eup %1476 }
 0x65b   : > { %v1479_v28 = vpop.eup %1478 }
 0x65c   : > { %v1481_v32 = vpop.eup %1480 }
 0x65d   : > { %v1483_v36 = vpop.eup %1482 }
 0x65e   : > { %v590_v38 = vmul.f32 %v1483_v36, %v1840_v52 }
 0x694   : > { %v752_v13 = vpop.f32.mrb[6].mxu1 }
 0x695   : > { %v756_v26 = vmul.f32 %v1477_v25, %v752_v13  ;;  %v1353_v27 = vpop.f32.mrb[7].mxu1 }
 0x697   : > { %1090 = vrot.lane.b32.xlu1 %v756_v26, %s1600_s23 }
 0x698   : > { %v918_v29 = vpop.f32.mrb[8].mxu1 }
 0x699   : > { %v922_v30 = vmul.f32 %v1479_v28, %v918_v29  ;;  %v1363_v31 = vpop.f32.mrb[9].mxu1 }
 0x69b   : > { %1094 = vrot.lane.b32.xlu0 %v922_v30, %s1601_s24 }
 0x69c   : > { %v1084_v10 = vpop.f32.mrb[10].mxu1 }
 0x69d   : > { %v1088_v33 = vmul.f32 %v1481_v32, %v1084_v10  ;;  %v1373_v34 = vpop.f32.mrb[11].mxu1 }
 0x69f   : > { %1098 = vrot.lane.b32.xlu1 %v1088_v33, %s1602_s8 }
 0x709   : > { %v1091_v37 = vpop.permute.xlu1 %1090 }
 0x70a   : > { %v1101_v40 = vsel %vm428_vm2, %v590_v38, %v1091_v37 }
 0x70d   : > { %v1095_v39 = vpop.permute.xlu0 %1094 }
 0x70e   : > { %v1103_v41 = vsel %vm1102_vm3, %v1101_v40, %v1095_v39 }
 0x711   : > { %v1099_v42 = vpop.permute.xlu1 %1098 }
 0x712   : > { %v1105_v43 = vsel %vm1104_vm4, %v1103_v41, %v1099_v42 }
 0x713   : > { %1383 = vmatmul.mubr.msk.f32.vlgmr.msra.gmra.mrb[6].mxu0 %vm312_vm0, %v1105_v43 }
 0x7e6   : > { %v1186_v45 = vpop.f32.mrb[6].mxu0 }
 0x7e7   : > { %v1187_v46 = vadd.f32 %v1293_v44, %v1186_v45  ;;  %v1384_v47 = vpop.f32.mrb[7].mxu0 }
 0x7e9   : > { %v1190_v48 = vadd.f32 %v1187_v46, %v1764_v0 }
 0x7eb   : > { %1191 = vst.msk [vmem:[%s308_s9] sm:$0xff] %vm312_vm0, %v1190_v48 }
 0x7ec PF: > { %p18_p8 = scmp.ge.s32.totalorder %s1687_s11, 4   ;;  %s1905_s24 = smov %s1572_s25 }
 0x7ed   : > { %s1906_s25 = smov %s1576_s26  ;;  %s1907_s26 = smov %s1713_s14 }
 0x7ee   : > { %s1908_s27 = smov %s1687_s11  ;;  %20 = sbr.rel (!%p18_p8) target bundleno = 4 (0x4), region = 92 }
 0x7f5   :  { %1211 = vsyncpa [#allocation3], 1 }
 0x7f6   :  { %1213 = vsyncpa [#allocation3 + $0x1], 1 }
 0x7f7   :  { %1214 = vsyncpa [#allocation5], 1 }

// kernel: processor_forward.6
= control target key start
LH: loop header
LB: loop body
LE: loop exit
PB: predicated region body
PF: predicated region fallthrough
CT: control target
= control target key end

     0   :  { %s1445_s24 = smov 0   ;;  %s1585_s0 = inlined_call_operand.vmem [shape: f32[2,8,32], index: 0, kind: input, shape index: {}]   ;;  %s1586_s1 = inlined_call_operand.vmem [shape: f32[1,32], index: 1, kind: input, shape index: {}]   ;;  %s1587_s2 = inlined_call_operand.vmem [shape: f32[1,32], index: 2, kind: input, shape index: {}]   ;;  %s1588_s3 = inlined_call_operand.vmem [shape: f32[32,96], index: 3, kind: input, shape index: {}]   ;;  %s1589_s4 = inlined_call_operand.vmem [shape: f32[1,96], index: 4, kind: input, shape index: {}]   ;;  %s1590_s5 = inlined_call_operand.vmem [shape: f32[32,32], index: 5, kind: input, shape index: {}]   ;;  %s1591_s6 = inlined_call_operand.vmem [shape: f32[1,32], index: 6, kind: input, shape index: {}]   ;;  %s1592_s7 = inlined_call_operand.vmem [shape: f32[2,8,32], index: 7, kind: output, shape index: {}]  }
   0x1 LB: > { %s1210_s25 = sadd.s32 4294967295, %s1386_s24   ;;  %p1214_p0 = scmp.ge.s32.totalorder %s1386_s24, 1  ;;  %s1386_s24 = sphi %s1445_s24, %s17_s24  }
   0x2   : > { %p236_p1 = scmp.lt.s32.totalorder %s1386_s24, 3 }
   0x4   : > { %p237_p2 = pnand %p1214_p0, %p236_p1 }
   0x5   : > { %p266_p3 = scmp.lt.s32.totalorder (!%p237_p2), %s1210_s25, 1  ;;  %vm277_vm0 = vcmask (!%p237_p2), 261120   ;;  %v306_v7 = vld [vmem:[%s1588_s3] sm:$0xff] (!%p237_p2)  ;;  %v307_v8 = vld [vmem:[%s1588_s3 + $0x8] sm:$0xff] (!%p237_p2)  ;;  %v308_v9 = vld [vmem:[%s1588_s3 + $0x10] sm:$0xff] (!%p237_p2)  ;;  %v1388_v10 = vmov (!%p237_p2), 0.0|0.0  }
   0x6   : > { %240 = sbr.rel (%p237_p2) target bundleno = 1965 (0x7ad), region = 48  ;;  %1325 = vmatprep.subr.bf16.mxu0 (!%p237_p2), %v1388_v10  ;;  %v1326_v11 = vpack.c.bf16 (!%p237_p2), %v307_v8, %v306_v7  ;;  %v309_v12 = vld [vmem:[%s1588_s3 + $0x18] sm:$0xff] (!%p237_p2)  ;;  %vm1389_vm1 = vmmov (!%p237_p2), 0   ;;  %v1390_v13 = vmov (!%p237_p2), 0.0   ;;  %v1217_v19 = vld [vmem:[%s1586_s1] ss:$0 sm:$0xff] (!%p237_p2) }
   0x7   : > { %1271 = vmatprep.mubr.msk.f32.mxu0 (!%p237_p2), %vm1389_vm1, %v1390_v13  ;;  %1274 = vmatprep.subr.mxu1 (!%p237_p2), %v1390_v13  ;;  %v1329_v14 = vpack.c.bf16 (!%p237_p2), %v309_v12, %v308_v9  ;;  %v1218_v21 = vld [vmem:[%s1587_s2] ss:$0 sm:$0xff] (!%p237_p2)  ;;  %s1391_s21 = smov (!%p237_p2), 64   ;;  %s1392_s22 = smov (!%p237_p2), 96   ;;  %vm393_vm2 = vcmask (!%p237_p2), 64512   ;;  %vm1067_vm3 = vcmask (!%p237_p2), 130048  }
   0x8   : > { %1276 = vmatprep.mubr.msk.f32.mxu1 (!%p237_p2), %vm1389_vm1, %v1390_v13  ;;  %1327 = vmatpush3.bf16.msra.mxu0 (!%p237_p2), %v1326_v11  ;;  %v1219_v24 = vld [vmem:[%s1589_s4] ss:$0 sm:$0xff] (!%p237_p2)  ;;  %s1393_s23 = smov (!%p237_p2), 88   ;;  %s1394_s27 = smov (!%p237_p2), 120   ;;  %vm1069_vm4 = vcmask (!%p237_p2), 195584  }
   0x9   : > { %1328 = vmatprep.subr.bf16.mxu0 (!%p237_p2), %v1388_v10  ;;  %s1395_s28 = smov (!%p237_p2), 80   ;;  %s1397_s30 = smov (!%p237_p2), 104  }
   0xa   : > { %s1398_s8 = smov (!%p237_p2), 112   ;;  %s1399_s9 = smov (!%p237_p2), 48  }
   0xb   : > { %s1400_s10 = smov (!%p237_p2), 56   ;;  %s1401_s11 = smov (!%p237_p2), 40  }
   0xc   : > { %1330 = vmatpush3.bf16.msra.mxu0 (!%p237_p2), %v1329_v14  ;;  %s1402_s20 = smov (!%p237_p2), 8  }
   0xd   : > { %s1594_s25 = smov (!%p266_p3, %s1210_s25), 1  ;;  %1294 = vmatprep.subr.mxu0 %v1390_v13 }
   0xe   : > { %s1215_s26 = sshll.u32 %s1594_s25, 3 }
   0xf   : > { %s269_s29 = scalar_lea.vmem %s1585_s0, %s1215_s26 }
  0x10   : > { %v1461_v0 = vld [vmem:[%s269_s29] sm:$0xff]  ;;  %s1396_s29 = smov 72  }
  0x11   : > { %v278_v1 = vsel %vm277_vm0, %v1461_v0, 0.0 }
  0x12   : > { %279 = vadd.xlane.f32.xlu0 %v278_v1 }
  0x9f   : > { %v280_v2 = vpop.xlane.xlu0 %279 }
  0xa0   : > { %v282_v3 = vmul.f32 0.03125, %v280_v2 }
  0xa2   : > { %v283_v4 = vsub.f32 %v1461_v0, %v282_v3 }
  0xa4   : > { %v284_v5 = vmul.f32 %v283_v4, %v283_v4 }
  0xa6   : > { %v285_v6 = vsel %vm277_vm0, %v284_v5, 0.0 }
  0xa7   : > { %286 = vadd.xlane.f32.xlu0 %v285_v6 }
 0x134   : > { %v287_v15 = vpop.xlane.xlu0 %286 }
 0x135   : > { %v288_v16 = vmul.f32 0.03125, %v287_v15 }
 0x137   : > { %v289_v17 = vadd.f32 1e-05, %v288_v16 }
 0x139   : > { %1362 = vrsqrt.f32 %v289_v17 }
 0x143   : > { %v1363_v18 = vpop.eup %1362 }
 0x144   : > { %v291_v20 = vmul.f32 %v1363_v18, %v283_v4  ;;  %v1071_v18 = vld [vmem:[%s1590_s5] sm:$0xff] }
 0x146   : > { %v298_v22 = vmul.f32 %v1217_v19, %v291_v20  ;;  %v1072_v19 = vld [vmem:[%s1590_s5 + $0x8] sm:$0xff] }
 0x147   : > { %v1332_v20 = vpack.c.bf16 %v1072_v19, %v1071_v18 }
 0x148   : > { %v305_v23 = vadd.f32 %v1218_v21, %v298_v22  ;;  %v1074_v21 = vld [vmem:[%s1590_s5 + $0x18] sm:$0xff] }
 0x14a   : > { %1272 = vmatmul.mubr.msk.f32.vlgmr.msra.gmra.mrb[0].mxu0 %vm277_vm0, %v305_v23 }
 0x14b   : > { %1296 = vmatprep.mubr.msk.f32.mxu0 %vm1389_vm1, %v1390_v13 }
 0x21d   : > { %v386_v25 = vpop.f32.mrb[0].mxu0 }
 0x21e   : > { %v1499_v26 = vadd.f32 %v1219_v24, %v386_v25  ;;  %v1273_v27 = vpop.f32.mrb[1].mxu0 }
 0x220   : > { %479 = vrot.lane.b32.xlu0 %v1499_v26, %s1391_s21  ;;  %391 = vrot.lane.b32.xlu1 %v1499_v26, %s1392_s22  ;;  %s1403_s21 = smov 16   ;;  %s1404_s22 = smov 24  }
 0x224   : > { %558 = vrot.lane.b32.xlu0 %v1499_v26, %s1393_s23 }
 0x228   : > { %556 = vrot.lane.b32.xlu0 %v1499_v26, %s1394_s27 }
 0x22c   : > { %724 = vrot.lane.b32.xlu0 %v1499_v26, %s1395_s28 }
 0x230   : > { %890 = vrot.lane.b32.xlu0 %v1499_v26, %s1396_s29 }
 0x234   : > { %888 = vrot.lane.b32.xlu0 %v1499_v26, %s1397_s30  ;;  %s273_s30 = scalar_lea.vmem %s1592_s7, %s1215_s26 }
 0x292   : > { %v480_v28 = vpop.permute.xlu0 %479  ;;  %v392_v29 = vpop.permute.xlu1 %391 }
 0x293   : > { %1275 = vmatpush3.xpose.msk.msra.mxu1 %vm393_vm2, %v392_v29 }
 0x294   : > { %1279 = vmatprep.subr.mxu1 %v1390_v13 }
 0x296   : > { %v559_v30 = vpop.permute.xlu0 %558  ;;  %1277 = vmatmul.mubr.msk.f32.vlgmr.msra.gmra.mrb[0].mxu1 %vm393_vm2, %v1499_v26 }
 0x297   : > { %1280 = vmatpush3.msra.mxu1 %v480_v28  ;;  %1281 = vmatprep.mubr.msk.f32.mxu1 %vm1389_vm1, %v1390_v13 }
 0x298   : > { %1284 = vmatprep.subr.mxu1 %v1390_v13 }
 0x29a   : > { %v557_v31 = vpop.permute.xlu0 %556 }
 0x29e   : > { %v725_v32 = vpop.permute.xlu0 %724 }
 0x29f   : > { %1295 = vmatpush3.xpose.msk.msra.mxu0 %vm393_vm2, %v725_v32 }
 0x2a0   : > { %1304 = vmatprep.subr.mxu0 %v1390_v13 }
 0x2a2   : > { %v891_v39 = vpop.permute.xlu0 %890 }
 0x2a6   : > { %v889_v42 = vpop.permute.xlu0 %888 }
 0x369   : > { %v464_v33 = vpop.f32.mrb[0].mxu1 }
 0x36a   : > { %v468_v34 = vmul.f32 0.35355338, %v464_v33  ;;  %v1278_v35 = vpop.f32.mrb[1].mxu1 }
 0x36c   : > { %v469_v36 = vsel %vm393_vm2, %v468_v34, -inf }
 0x36d   : > { %470 = vmax.xlane.f32.xlu1 %v469_v36 }
 0x37e   : > { %722 = vrot.lane.b32.xlu1 %v1499_v26, %s1398_s8 }
 0x3fa   : > { %v471_v37 = vpop.xlane.xlu1 %470 }
 0x3fb   : > { %v472_v38 = vsub.f32 %v468_v34, %v471_v37 }
 0x3fd   : > { %v473_v40 = vmul.f32 1.442695, %v472_v38 }
 0x3fe   : > { %v723_v41 = vpop.permute.xlu1 %722 }
 0x3ff   : > { %1364 = vpow2.f32 %v473_v40  ;;  %1297 = vmatmul.mubr.msk.f32.vlgmr.msra.gmra.mrb[2].mxu0 %vm393_vm2, %v723_v41 }
 0x400   : > { %1305 = vmatpush3.xpose.msk.msra.mxu0 %vm393_vm2, %v891_v39  ;;  %1306 = vmatprep.mubr.msk.f32.mxu0 %vm1389_vm1, %v1390_v13 }
 0x401   : > { %1331 = vmatprep.subr.bf16.mxu0 %v1388_v10 }
 0x403   : > { %1307 = vmatmul.mubr.msk.f32.vlgmr.msra.gmra.mrb[4].mxu0 %vm393_vm2, %v889_v42 }
 0x404   : > { %1322 = vmatprep.mubr.msk.f32.mxu0 %vm1389_vm1, %v1390_v13  ;;  %1333 = vmatpush3.bf16.msra.mxu0 %v1332_v20 }
 0x405   : > { %1334 = vmatprep.subr.bf16.mxu0 %v1388_v10 }
 0x409   : > { %v1365_v43 = vpop.eup %1364 }
 0x40a   : > { %1282 = vmatmul.mubr.msk.f32.vlgmr.msra.gmra.mrb[2].mxu1 %vm393_vm2, %v1365_v43  ;;  %v475_v9 = vsel %vm393_vm2, %v1365_v43, 0.0 }
 0x40b   : > { %1285 = vmatpush3.xpose.msk.msra.mxu1 %vm393_vm2, %v559_v30  ;;  %1286 = vmatprep.mubr.msk.f32.mxu1 %vm1389_vm1, %v1390_v13 }
 0x40c   : > { %1289 = vmatprep.subr.mxu1 %v1390_v13 }
 0x40e   : > { %1287 = vmatmul.mubr.msk.f32.vlgmr.msra.gmra.mrb[4].mxu1 %vm393_vm2, %v557_v31 }
 0x40f   : > { %1291 = vmatprep.mubr.msk.f32.mxu1 %vm1389_vm1, %v1390_v13 }
 0x4d2   : > { %v796_v44 = vpop.f32.mrb[2].mxu0 }
 0x4d3   : > { %v800_v45 = vmul.f32 0.35355338, %v796_v44  ;;  %v1298_v46 = vpop.f32.mrb[3].mxu0  ;;  %v1233_v44 = vld [vmem:[%s1591_s6] ss:$0 sm:$0xff] }
 0x4d5   : > { %v801_v47 = vsel %vm393_vm2, %v800_v45, -inf }
 0x4d6   : > { %802 = vmax.xlane.f32.xlu1 %v801_v47  ;;  %v962_v48 = vpop.f32.mrb[4].mxu0 }
 0x4d7   : > { %v966_v49 = vmul.f32 0.35355338, %v962_v48  ;;  %v1308_v50 = vpop.f32.mrb[5].mxu0 }
 0x4d9   : > { %v967_v51 = vsel %vm393_vm2, %v966_v49, -inf }
 0x4da   : > { %968 = vmax.xlane.f32.xlu0 %v967_v51 }
 0x4dd   : > { %v1537_v52 = vpop.f32.mrb[2].mxu1 }
 0x4de   : > { %v1283_v53 = vpop.f32.mrb[3].mxu1 }
 0x4e1   : > { %v630_v54 = vpop.f32.mrb[4].mxu1 }
 0x4e2   : > { %v634_v55 = vmul.f32 0.35355338, %v630_v54  ;;  %v1288_v56 = vpop.f32.mrb[5].mxu1 }
 0x4e4   : > { %v635_v57 = vsel %vm393_vm2, %v634_v55, -inf }
 0x4e5   : > { %636 = vmax.xlane.f32.xlu0 %v635_v57 }
 0x4e7   : > { %811 = vrot.lane.b32.xlu1 %v1499_v26, %s1399_s9 }
 0x4fb   : > { %645 = vrot.lane.b32.xlu0 %v1499_v26, %s1400_s10 }
 0x4ff   : > { %977 = vrot.lane.b32.xlu0 %v1499_v26, %s1401_s11 }
 0x563   : > { %v803_v58 = vpop.xlane.xlu1 %802 }
 0x564   : > { %v804_v59 = vsub.f32 %v800_v45, %v803_v58 }
 0x566   : > { %v805_v60 = vmul.f32 1.442695, %v804_v59 }
 0x567   : > { %v969_v61 = vpop.xlane.xlu0 %968  ;;  %v812_v12 = vpop.permute.xlu1 %811 }
 0x568   : > { %1366 = vpow2.f32 %v805_v60  ;;  %v970_v62 = vsub.f32 %v966_v49, %v969_v61 }
 0x56a   : > { %v971_v63 = vmul.f32 1.442695, %v970_v62 }
 0x56c   : > { %1368 = vpow2.f32 %v971_v63 }
 0x572   : > { %v1367_v1 = vpop.eup %1366  ;;  %v637_v2 = vpop.xlane.xlu0 %636 }
 0x573   : > { %v638_v3 = vsub.f32 %v634_v55, %v637_v2  ;;  %v807_v4 = vsel %vm393_vm2, %v1367_v1, 0.0 }
 0x574   : > { %808 = vadd.xlane.f32.xlu0 %v807_v4 }
 0x575   : > { %v639_v5 = vmul.f32 1.442695, %v638_v3 }
 0x576   : > { %v1369_v6 = vpop.eup %1368  ;;  %v646_v7 = vpop.permute.xlu0 %645 }
 0x577   : > { %1370 = vpow2.f32 %v639_v5  ;;  %1290 = vmatpush3.msra.mxu1 %v646_v7  ;;  %v973_v8 = vsel %vm393_vm2, %v1369_v6, 0.0 }
 0x578   : > { %974 = vadd.xlane.f32.xlu0 %v973_v8  ;;  %1299 = vmatprep.subr.mxu1 %v1390_v13 }
 0x57a   : > { %v978_v15 = vpop.permute.xlu0 %977 }
 0x57c   : > { %476 = vadd.xlane.f32.xlu0 %v475_v9 }
 0x581   : > { %v1371_v11 = vpop.eup %1370 }
 0x582   : > { %1292 = vmatmul.mubr.msk.f32.vlgmr.msra.gmra.mrb[6].mxu1 %vm393_vm2, %v1371_v11  ;;  %v641_v14 = vsel %vm393_vm2, %v1371_v11, 0.0 }
 0x583   : > { %1300 = vmatpush3.msra.mxu1 %v812_v12  ;;  %642 = vadd.xlane.f32.xlu1 %v641_v14 }
 0x584   : > { %1301 = vmatprep.mubr.msk.f32.mxu1 %vm1389_vm1, %v1390_v13  ;;  %1309 = vmatprep.subr.mxu1 %v1390_v13 }
 0x586   : > { %1302 = vmatmul.mubr.msk.f32.vlgmr.msra.gmra.mrb[8].mxu1 %vm393_vm2, %v1367_v1 }
 0x587   : > { %1310 = vmatpush3.msra.mxu1 %v978_v15  ;;  %1311 = vmatprep.mubr.msk.f32.mxu1 %vm1389_vm1, %v1390_v13  ;;  %v1073_v13 = vld [vmem:[%s1590_s5 + $0x10] sm:$0xff] }
 0x588   : > { %v1335_v23 = vpack.c.bf16 %v1074_v21, %v1073_v13 }
 0x58a   : > { %1312 = vmatmul.mubr.msk.f32.vlgmr.msra.gmra.mrb[10].mxu1 %vm393_vm2, %v1369_v6  ;;  %1336 = vmatpush3.bf16.msra.mxu0 %v1335_v23 }
 0x601   : > { %v809_v17 = vpop.xlane.xlu0 %808 }
 0x605   : > { %v975_v22 = vpop.xlane.xlu0 %974 }
 0x609   : > { %v477_v35 = vpop.xlane.xlu0 %476 }
 0x610   : > { %v643_v16 = vpop.xlane.xlu1 %642 }
 0x611   : > { %1372 = vrcp.f32 %v643_v16 }
 0x612   : > { %1374 = vrcp.f32 %v809_v17 }
 0x613   : > { %1376 = vrcp.f32 %v975_v22 }
 0x614   : > { %1378 = vrcp.f32 %v477_v35 }
 0x61b   : > { %v1373_v24 = vpop.eup %1372 }
 0x61c   : > { %v1375_v28 = vpop.eup %1374 }
 0x61d   : > { %v1377_v31 = vpop.eup %1376 }
 0x61e   : > { %v1379_v36 = vpop.eup %1378 }
 0x61f   : > { %v555_v38 = vmul.f32 %v1379_v36, %v1537_v52 }
 0x655   : > { %v717_v25 = vpop.f32.mrb[6].mxu1 }
 0x656   : > { %v721_v26 = vmul.f32 %v1373_v24, %v717_v25  ;;  %v1293_v27 = vpop.f32.mrb[7].mxu1 }
 0x658   : > { %1055 = vrot.lane.b32.xlu1 %v721_v26, %s1402_s20 }
 0x659   : > { %v883_v10 = vpop.f32.mrb[8].mxu1 }
 0x65a   : > { %v887_v29 = vmul.f32 %v1375_v28, %v883_v10  ;;  %v1303_v30 = vpop.f32.mrb[9].mxu1 }
 0x65c   : > { %1059 = vrot.lane.b32.xlu0 %v887_v29, %s1403_s21 }
 0x65d   : > { %v1049_v32 = vpop.f32.mrb[10].mxu1 }
 0x65e   : > { %v1053_v33 = vmul.f32 %v1377_v31, %v1049_v32  ;;  %v1313_v34 = vpop.f32.mrb[11].mxu1 }
 0x660   : > { %1063 = vrot.lane.b32.xlu1 %v1053_v33, %s1404_s22 }
 0x6ca   : > { %v1056_v37 = vpop.permute.xlu1 %1055 }
 0x6cb   : > { %v1066_v40 = vsel %vm393_vm2, %v555_v38, %v1056_v37 }
 0x6ce   : > { %v1060_v39 = vpop.permute.xlu0 %1059 }
 0x6cf   : > { %v1068_v41 = vsel %vm1067_vm3, %v1066_v40, %v1060_v39 }
 0x6d2   : > { %v1064_v42 = vpop.permute.xlu1 %1063 }
 0x6d3   : > { %v1070_v43 = vsel %vm1069_vm4, %v1068_v41, %v1064_v42 }
 0x6d4   : > { %1323 = vmatmul.mubr.msk.f32.vlgmr.msra.gmra.mrb[6].mxu0 %vm277_vm0, %v1070_v43 }
 0x7a7   : > { %v1151_v45 = vpop.f32.mrb[6].mxu0 }
 0x7a8   : > { %v1152_v46 = vadd.f32 %v1233_v44, %v1151_v45  ;;  %v1324_v47 = vpop.f32.mrb[7].mxu0 }
 0x7aa   : > { %v1155_v48 = vadd.f32 %v1152_v46, %v1461_v0 }
 0x7ac   : > { %1156 = vst.msk [vmem:[%s273_s30] sm:$0xff] %vm277_vm0, %v1155_v48 }
 0x7ad PF: > { %s17_s24 = sadd.s32 1, %s1386_s24  }
 0x7ae   : > { %p14_p4 = scmp.ge.s32.totalorder %s17_s24, 4  }
 0x7b0   :  { %16 = sbr.rel (!%p14_p4) target bundleno = 1 (0x1), region = 78 }

// kernel: processor_forward.7
= control target key start
LH: loop header
LB: loop body
LE: loop exit
PB: predicated region body
PF: predicated region fallthrough
CT: control target
= control target key end

     0   :  { %vm37_vm0 = vcmask 261120   ;;  %s683_s0 = inlined_call_operand.vmem [shape: f32[16,32], index: 0, kind: input, shape index: {}]   ;;  %s684_s1 = inlined_call_operand.vmem [shape: f32[1,32], index: 1, kind: input, shape index: {}]   ;;  %s685_s2 = inlined_call_operand.vmem [shape: f32[1,32], index: 2, kind: input, shape index: {}]   ;;  %s686_s3 = inlined_call_operand.vmem [shape: f32[32,64], index: 3, kind: input, shape index: {}]   ;;  %s687_s4 = inlined_call_operand.vmem [shape: f32[1,64], index: 4, kind: input, shape index: {}]   ;;  %s688_s5 = inlined_call_operand.vmem [shape: f32[32,64], index: 5, kind: input, shape index: {}]   ;;  %s689_s6 = inlined_call_operand.vmem [shape: f32[1,64], index: 6, kind: input, shape index: {}]   ;;  %s690_s7 = inlined_call_operand.vmem [shape: f32[64,32], index: 7, kind: input, shape index: {}]   ;;  %s691_s8 = inlined_call_operand.vmem [shape: f32[1,32], index: 8, kind: input, shape index: {}]   ;;  %s692_s9 = inlined_call_operand.hbm [shape: f32[16,32], index: 9, kind: output, shape index: {}]  }
   0x1   :  { %v585_v0 = vld [vmem:[%s683_s0] sm:$0xff]  ;;  %v590_v1 = vld [vmem:[%s683_s0 + $0x8] sm:$0xff] }
   0x2   :  { %14 = vsyncpa [#allocation3], 0  ;;  %v38_v2 = vsel %vm37_vm0, %v585_v0, 0.0  ;;  %v41_v3 = vsel %vm37_vm0, %v590_v1, 0.0  ;;  %v81_v14 = vld [vmem:[%s686_s3] sm:$0xff]  ;;  %v82_v15 = vld [vmem:[%s686_s3 + $0x8] sm:$0xff] }
   0x3   :  { %39 = vadd.xlane.f32.xlu0 %v38_v2  ;;  %v83_v16 = vld [vmem:[%s686_s3 + $0x10] sm:$0xff]  ;;  %v462_v17 = vpack.c.bf16 %v82_v15, %v81_v14  ;;  %v84_v18 = vld [vmem:[%s686_s3 + $0x18] sm:$0xff]  ;;  %v173_v20 = vld [vmem:[%s688_s5] sm:$0xff]  ;;  %vm286_vm1 = vcmask 523264  }
   0x4   :  { %v466_v19 = vpack.c.bf16 %v84_v18, %v83_v16  ;;  %v174_v21 = vld [vmem:[%s688_s5 + $0x8] sm:$0xff]  ;;  %v388_v30 = vld [vmem:[%s684_s1] ss:$0 sm:$0xff]  ;;  %v175_v37 = vld [vmem:[%s688_s5 + $0x10] sm:$0xff] }
   0x5   :  { %463 = vmatprep.subr.bf16.mxu1 %v462_v17  ;;  %v470_v22 = vpack.c.bf16 %v174_v21, %v173_v20  ;;  %v389_v32 = vld [vmem:[%s685_s2] ss:$0 sm:$0xff]  ;;  %v176_v38 = vld [vmem:[%s688_s5 + $0x18] sm:$0xff]  ;;  %v272_v43 = vld [vmem:[%s690_s7 + $0x8] sm:$0xff] }
   0x6   :  { %465 = vmatpush3.bf16.msra.mxu1 %v462_v17  ;;  %v474_v41 = vpack.c.bf16 %v176_v38, %v175_v37  ;;  %v271_v42 = vld [vmem:[%s690_s7] sm:$0xff]  ;;  %v273_v45 = vld [vmem:[%s690_s7 + $0x10] sm:$0xff]  ;;  %v274_v46 = vld [vmem:[%s690_s7 + $0x18] sm:$0xff] }
   0x7   :  { %42 = vadd.xlane.f32.xlu0 %v41_v3  ;;  %467 = vmatprep.subr.bf16.mxu1 %v466_v19  ;;  %v478_v44 = vpack.c.bf16 %v272_v43, %v271_v42  ;;  %v482_v47 = vpack.c.bf16 %v274_v46, %v273_v45  ;;  %v275_v48 = vld [vmem:[%s690_s7 + $0x20] sm:$0xff]  ;;  %v276_v49 = vld [vmem:[%s690_s7 + $0x28] sm:$0xff]  ;;  %v277_v51 = vld [vmem:[%s690_s7 + $0x30] sm:$0xff] }
   0x8   :  { %v486_v50 = vpack.c.bf16 %v276_v49, %v275_v48  ;;  %v278_v52 = vld [vmem:[%s690_s7 + $0x38] sm:$0xff]  ;;  %v393_v56 = vld [vmem:[%s689_s6] ss:$0 sm:$0xff] }
   0x9   :  { %479 = vmatprep.subr.bf16.mxu0 %v478_v44  ;;  %v490_v53 = vpack.c.bf16 %v278_v52, %v277_v51  ;;  %v390_v2 = vld [vmem:[%s687_s4] ss:$0 sm:$0xff]  ;;  %s529_s4 = smov [#allocation2]  }
   0xa   :  { %469 = vmatpush3.bf16.msra.mxu1 %v466_v19  ;;  %481 = vmatpush3.bf16.msra.mxu0 %v478_v44  ;;  %v396_v14 = vld [vmem:[%s691_s8] ss:$0 sm:$0xff]  ;;  %s377_s25 = sshll.u32 %s529_s4, 4  ;;  %s378_s25 = int_to_ptr.vmem [resolvable:$true] %s377_s25 }
   0xb   :  { %471 = vmatprep.subr.bf16.mxu1 %v470_v22  ;;  %483 = vmatprep.subr.bf16.mxu0 %v482_v47  ;;  %s505_s26 = scalar_lea.vmem %s378_s25, 256  ;;  %p510_p1 = scmp.lt.s32.totalorder %s378_s25, %s378_s25 }
   0xc   :  { %p506_p0 = scmp.ne.s32.totalorder %s378_s25, %s505_s26  ;;  %p511_p2 = scmp.lt.s32.totalorder %s505_s26, %s505_s26 }
   0xe   :  { %485 = vmatpush3.bf16.msra.mxu0 %v482_v47  ;;  %p512_p3 = por %p511_p2, %p510_p1 }
   0xf   :  { %487 = vmatprep.subr.bf16.mxu0 %v486_v50 }
  0x10   :  { %p513_p4 = pnand %p512_p3, %p506_p0 }
  0x12   :  { %489 = vmatpush3.bf16.msra.mxu0 %v486_v50 }
  0x13   :  { %491 = vmatprep.subr.bf16.mxu0 %v490_v53 }
  0x16   :  { %493 = vmatpush3.bf16.msra.mxu0 %v490_v53 }
  0x90   :  { %v40_v4 = vpop.xlane.xlu0 %39 }
  0x91   :  { %v45_v5 = vmul.f32 0.03125, %v40_v4 }
  0x93   :  { %v47_v6 = vsub.f32 %v585_v0, %v45_v5 }
  0x94   :  { %v43_v7 = vpop.xlane.xlu0 %42 }
  0x95   :  { %v46_v8 = vmul.f32 0.03125, %v43_v7  ;;  %v49_v9 = vmul.f32 %v47_v6, %v47_v6 }
  0x97   :  { %v48_v10 = vsub.f32 %v590_v1, %v46_v8  ;;  %v51_v11 = vsel %vm37_vm0, %v49_v9, 0.0 }
  0x98   :  { %52 = vadd.xlane.f32.xlu1 %v51_v11 }
  0x99   :  { %v50_v12 = vmul.f32 %v48_v10, %v48_v10 }
  0x9b   :  { %v54_v13 = vsel %vm37_vm0, %v50_v12, 0.0 }
  0x9c   :  { %55 = vadd.xlane.f32.xlu1 %v54_v13 }
 0x125   :  { %v53_v23 = vpop.xlane.xlu1 %52 }
 0x126   :  { %v57_v24 = vmul.f32 0.03125, %v53_v23 }
 0x128   :  { %v59_v25 = vadd.f32 1e-05, %v57_v24 }
 0x129   :  { %v56_v26 = vpop.xlane.xlu1 %55 }
 0x12a   :  { %497 = vrsqrt.f32 %v59_v25  ;;  %v58_v27 = vmul.f32 0.03125, %v56_v26 }
 0x12c   :  { %v60_v28 = vadd.f32 1e-05, %v58_v27 }
 0x12e   :  { %499 = vrsqrt.f32 %v60_v28 }
 0x134   :  { %v498_v29 = vpop.eup %497 }
 0x135   :  { %v63_v31 = vmul.f32 %v498_v29, %v47_v6 }
 0x137   :  { %v71_v33 = vmul.f32 %v388_v30, %v63_v31 }
 0x138   :  { %v500_v34 = vpop.eup %499 }
 0x139   :  { %v64_v35 = vmul.f32 %v500_v34, %v48_v10  ;;  %v79_v36 = vadd.f32 %v389_v32, %v71_v33 }
 0x13b   :  { %v72_v39 = vmul.f32 %v388_v30, %v64_v35  ;;  %429 = vmatprep.mubr.msk.f32.mxu1 %vm37_vm0, %v79_v36 }
 0x13d   :  { %v80_v40 = vadd.f32 %v389_v32, %v72_v39 }
 0x13f   :  { %430 = vmatmul.mubr.msk.f32.vlgmr.msra.gmra.mrb[0].mxu1 %vm37_vm0, %v80_v40 }
 0x140   :  { %473 = vmatpush3.bf16.msra.mxu1 %v470_v22  ;;  %440 = vmatprep.mubr.msk.f32.mxu1 %vm37_vm0, %v79_v36 }
 0x141   :  { %475 = vmatprep.subr.bf16.mxu1 %v474_v41 }
 0x144   :  { %477 = vmatpush3.bf16.msra.mxu1 %v474_v41 }
 0x147   :  { %441 = vmatmul.mubr.msk.f32.vlgmr.msra.gmra.mrb[2].mxu1 %vm37_vm0, %v80_v40 }
 0x212   :  { %v431_v54 = vpop.f32.mrb[0].mxu1 }
 0x213   :  { %v164_v55 = vpop.f32.mrb[1].mxu1  ;;  %v170_v8 = vadd.f32 %v431_v54, %v390_v2 }
 0x214   :  { %v165_v10 = vadd.f32 %v390_v2, %v164_v55 }
 0x21a   :  { %v442_v57 = vpop.f32.mrb[2].mxu1 }
 0x21b   :  { %v256_v58 = vadd.f32 %v442_v57, %v393_v56  ;;  %v250_v59 = vpop.f32.mrb[3].mxu1 }
 0x21c   :  { %v251_v60 = vadd.f32 %v393_v56, %v250_v59 }
 0x21d   :  { %v262_v61 = vmul.f32 0.70710677, %v256_v58  ;;  %v260_v4 = vmul.f32 0.5, %v256_v58 }
 0x21e   :  { %v261_v62 = vmul.f32 0.70710677, %v251_v60  ;;  %v259_v6 = vmul.f32 0.5, %v251_v60 }
 0x21f   :  { %501 = verf.f32 %v262_v61 }
 0x220   :  { %503 = verf.f32 %v261_v62 }
 0x229   :  { %v502_v63 = vpop.eup %501 }
 0x22a   :  { %v504_v3 = vpop.eup %503  ;;  %v266_v5 = vadd.f32 1.0, %v502_v63 }
 0x22b   :  { %v265_v7 = vadd.f32 1.0, %v504_v3 }
 0x22c   :  { %v268_v9 = vmul.f32 %v266_v5, %v260_v4 }
 0x22d   :  { %v267_v11 = vmul.f32 %v265_v7, %v259_v6 }
 0x22e   :  { %v270_v12 = vmul.f32 %v268_v9, %v170_v8 }
 0x22f   :  { %v269_v13 = vmul.f32 %v267_v11, %v165_v10 }
 0x231   :  { %459 = vmatprep.mubr.msk.f32.mxu0 %vm286_vm1, %v269_v13 }
 0x232   :  { %460 = vmatmul.mubr.msk.f32.vlgmr.msra.gmra.mrb[0].mxu0 %vm286_vm1, %v270_v12 }
 0x305   :  { %v461_v15 = vpop.f32.mrb[0].mxu0 }
 0x306   :  { %v365_v16 = vadd.f32 %v461_v15, %v396_v14  ;;  %v359_v17 = vpop.f32.mrb[1].mxu0 }
 0x307   :  { %v360_v18 = vadd.f32 %v396_v14, %v359_v17 }
 0x308   :  { %v369_v19 = vadd.f32 %v365_v16, %v590_v1 }
 0x309   :  { %v368_v20 = vadd.f32 %v360_v18, %v585_v0 }
 0x30a   :  { %371 = vst.msk [vmem:[#allocation2 + $0x8] sm:$0xff] %vm37_vm0, %v369_v19 }
 0x30b   :  { %370 = vst.msk [vmem:[#allocation2] sm:$0xff] %vm37_vm0, %v368_v20 }
 0x30c   :  { %516 = shalt.err (!%p513_p4)
}
 0x30d   :  { %s517_s28 = scalar_lea.hbm %s692_s9, 256 }
 0x30e   :  { %p518_p5 = scmp.ne.s32.totalorder %s692_s9, %s517_s28  ;;  %p521_p6 = scmp.lt.u32.totalorder %s517_s28, %s692_s9 }
 0x310   :  { %p523_p7 = pnand %p521_p6, %p518_p5 }
 0x312   :  { %526 = shalt.err (!%p523_p7)
}
 0x313   :  { %s530_s10 = smov 128   ;;  %s531_s5 = smov 8  }
 0x314   :  { %383 = dma.vmem_to_hbm [thread:$0]  %s378_s25, 256, %s692_s9, [#allocation3], %s530_s10, %s530_s10, %s531_s5  }
 0x315   :  { %527 = dma.done.wait [#allocation3], 256  }
 0x316   :  { %528 = vsyncadd [#allocation3], 4294967040 }
 0x317   :  { %387 = vsyncpa [#allocation3], 1 }

</bundles_post_ra>
